<compile_context>
chip_gen: v7x
topology: tpu7x:2x2x1
jax: 0.10.0
libtpu: 0.0.40
codegen_flags: <defaults>
</compile_context>

<pallas_src>
import math

import jax
import jax.numpy as jnp
from jax import lax
from jax.experimental import pallas as pl
from jax.experimental.pallas import tpu as pltpu

EPS = 1e-5   # nn.LayerNorm default eps
LANE = 128
SUB = 8


def _round_up(v, m):
    return (v + m - 1) // m * m


def _make_gelu(approx):
    if approx:
        c = 0.7978845608028654  # sqrt(2/pi)

        def g(v):  # tanh approximation (EUP-friendly); deviates slightly from erf
            return 0.5 * v * (1.0 + lax.tanh(c * (v + 0.044715 * v * v * v)))
    else:
        def g(v):  # exact erf GELU, matches F.gelu default
            return 0.5 * v * (1.0 + lax.erf(v * 0.7071067811865476))
    return g


def _vmem_capacity():
    try:
        return int(pltpu.get_tpu_info().vmem_capacity_bytes)
    except Exception:
        return 64 << 20          # conservative (v7x per-TC) fallback


def _resolve_matmul_dtype(matmul_dtype):
    if matmul_dtype != "auto":
        return matmul_dtype
    kind = ""
    try:
        kind = jax.devices()[0].device_kind.lower()
    except Exception:
        pass
    # v5e: f32 MXU passes are slow; default to bf16 inputs (f32 accumulation).
    if ("v5 lite" in kind) or ("v5e" in kind) or ("v5lite" in kind):
        return jnp.bfloat16
    return None


def _pick_chunk(hcp, target=1024):
    """Largest multiple of 128 that divides hcp and is <= target."""
    if hcp <= target:
        return hcp
    best = LANE
    c = LANE
    while c <= target:
        if hcp % c == 0:
            best = c
        c += LANE
    return best


def _make_kernel(TB, Np, Dp, N, D, Htp, CH, n_ch, mm_dtype, slice_out, approx_gelu):
    rows = TB * Np
    needs_mask = (Dp != D)
    inv_d = 1.0 / float(D)
    gelu = _make_gelu(approx_gelu)

    def cast(v):
        return v if mm_dtype is None else v.astype(mm_dtype)

    def layernorm(r, gamma, beta, mask):
        # PyTorch LayerNorm semantics (biased variance), statistics over true D;
        # padded lanes (gamma=beta=0, xm masked) stay exactly zero.
        mean = jnp.sum(r, axis=-1, keepdims=True) * inv_d
        xm = r - mean
        if needs_mask:
            xm = xm * mask
        var = jnp.sum(xm * xm, axis=-1, keepdims=True) * inv_d
        return xm * lax.rsqrt(var + EPS) * gamma + beta

    def kernel(x_ref,
               tln_g_ref, tln_b_ref, tw0_ref, tb0_ref, tw1_ref, tb1_ref,
               cln_g_ref, cln_b_ref, cw0_ref, cb0_ref, cw1_ref, cb1_ref,
               o_ref, xt_ref):
        mask = None
        if needs_mask:
            mask = (lax.broadcasted_iota(jnp.int32, (1, Dp), 1) < D).astype(jnp.float32)

        # flattened (TB*Np, Dp) slab; reshape is free (Np % 8 == 0, Dp % 128 == 0)
        x2 = x_ref[...].astype(jnp.float32).reshape(rows, Dp)

        # ---------------- token mixer: x += (FF_token(LN(x)^T))^T ----------------
        y2 = layernorm(x2, tln_g_ref[...], tln_b_ref[...], mask)      # (rows, Dp) f32

        w0 = tw0_ref[...]                                             # (Htp, Np), mm dtype
        w1 = tw1_ref[...]                                             # (Np, Htp), mm dtype
        # hoisted bias broadcasts (JAX does not CSE broadcast_in_dim)
        b0 = jnp.broadcast_to(tb0_ref[...], (Htp, Dp))                # f32
        b1 = jnp.broadcast_to(tb1_ref[...], (Np, Dp))                 # f32

        for b in range(TB):                                           # static unroll
            rsl = slice(b * Np, (b + 1) * Np)
            yb = cast(y2[rsl])                                        # (Np, Dp)
            h = gelu(jnp.dot(w0, yb, preferred_element_type=jnp.float32) + b0)   # (Htp, Dp)
            z = jnp.dot(w1, cast(h), preferred_element_type=jnp.float32) + b1    # (Np, Dp)
            if needs_mask:
                z = z * mask                      # keep padded lanes exactly zero
            xt_ref[pl.ds(b * Np, Np), :] = x2[rsl] + z                # f32 residual

        # ---------------- channel mixer: x += FF_channel(LN(x)) ----------------
        xt = xt_ref[...]                                              # (rows, Dp) f32
        y = layernorm(xt, cln_g_ref[...], cln_b_ref[...], mask)
        yc = cast(y)
        z = jnp.broadcast_to(cb1_ref[...], (rows, Dp))                # f32 accumulator
        for c in range(n_ch):                                         # Hcp-chunked FF
            csl = slice(c * CH, (c + 1) * CH)
            hc = gelu(jnp.dot(yc, cw0_ref[:, csl],
                              preferred_element_type=jnp.float32) + cb0_ref[:, csl])
            z = z + jnp.dot(cast(hc), cw1_ref[csl, :],
                            preferred_element_type=jnp.float32)

        res = (xt + z).reshape(TB, Np, Dp)
        if slice_out:
            res = res[:, :N, :D]                  # direct (B,N,D) store, no XLA slice
        o_ref[...] = res.astype(o_ref.dtype)

    return kernel


def mixer_block(x, params, *, tb=None, matmul_dtype="auto", approx_gelu=False):
    """MixerBlock forward.  x: (B, N, D).  params: see init_mixer_params.

    matmul_dtype: MXU input dtype ("auto" -> bf16 on v5e, f32 elsewhere; pass
    None / jnp.float32 for full f32, jnp.bfloat16 to force bf16).  Accumulation
    and all elementwise math (LayerNorm / GELU / residuals) stay float32.
    """
    B, N, D = x.shape
    Ht = params["tw0"].shape[0]
    Hc = params["cw0"].shape[0]

    mm_dtype = _resolve_matmul_dtype(matmul_dtype)
    use_cast = (mm_dtype is not None) and (jnp.dtype(mm_dtype) != jnp.dtype(jnp.float32))
    wdt = mm_dtype if use_cast else jnp.float32

    Np = _round_up(N, SUB)
    Dp = _round_up(D, LANE)
    Htp = _round_up(Ht, SUB)
    Hcp = _round_up(Hc, LANE)
    CH = _pick_chunk(Hcp)
    n_ch = Hcp // CH

    def pad2(a, r, c, dt=jnp.float32):
        a = jnp.pad(a, ((0, r - a.shape[0]), (0, c - a.shape[1])))
        return a.astype(dt)

    # Wrapper-side weight packing: channel weights pre-transposed to (in, out),
    # token biases as column vectors, everything padded (tokens->8, lanes->128).
    # Matmul weights are cast to the matmul dtype HERE (halves DMA + VMEM).
    weights = [
        pad2(params["tln_g"], 1, Dp),                       # (1, Dp)      f32
        pad2(params["tln_b"], 1, Dp),                       # (1, Dp)      f32
        pad2(params["tw0"], Htp, Np, wdt),                  # (Htp, Np)
        pad2(params["tb0"].reshape(Ht, 1), Htp, 1),         # (Htp, 1)     f32
        pad2(params["tw1"], Np, Htp, wdt),                  # (Np, Htp)
        pad2(params["tb1"].reshape(N, 1), Np, 1),           # (Np, 1)      f32
        pad2(params["cln_g"], 1, Dp),                       # (1, Dp)      f32
        pad2(params["cln_b"], 1, Dp),                       # (1, Dp)      f32
        pad2(params["cw0"].T, Dp, Hcp, wdt),                # (Dp, Hcp)    pre-transposed
        pad2(params["cb0"], 1, Hcp),                        # (1, Hcp)     f32
        pad2(params["cw1"].T, Hcp, Dp, wdt),                # (Hcp, Dp)    pre-transposed
        pad2(params["cb1"], 1, Dp),                         # (1, Dp)      f32
    ]

    if Np == N and Dp == D:
        xp = x
    else:
        xp = jnp.pad(x, ((0, 0), (0, Np - N), (0, Dp - D)))

    x_isz = jnp.dtype(x.dtype).itemsize
    o_isz = x_isz
    mm_isz = 2 if use_cast else 4
    w_bytes = sum(int(w.size) * w.dtype.itemsize for w in weights)

    cap = _vmem_capacity()                  # generation-aware (64 MiB v7x, 128 MiB v5e/v6e)
    budget = int(cap * 0.85)

    def need(tb_, wbufs):
        rows = tb_ * Np
        blk = 2 * rows * Dp * x_isz + 2 * rows * Dp * o_isz        # pipelined in/out blocks
        scratch = rows * Dp * 4                                    # xt slab
        live = rows * 4 * (4 * Dp + 2 * CH) + rows * mm_isz * (Dp + CH)   # f32/bf16 temporaries
        live += (Htp + Np) * Dp * 8                                # hoisted bias broadcasts etc.
        return blk + scratch + live + wbufs * w_bytes

    def pick_tb(wbufs):
        cands = [t for t in range(1, min(B, 32) + 1)               # 32 caps the static unroll
                 if B % t == 0 and need(t, wbufs) <= budget]
        if not cands:
            return 1
        def key(t):
            g = B // t
            tier = 2 if (g >= 2 and g % 2 == 0) else (1 if g >= 2 else 0)  # even grid -> 2 TCs
            return (tier, t)
        return max(cands, key=key)

    slice_out = (Np != N) or (Dp != D)

    def build_and_call(weight_bufs):
        tb_ = tb if tb is not None else pick_tb(weight_bufs)
        assert B % tb_ == 0, "tb must divide batch size"

        kernel = _make_kernel(tb_, Np, Dp, N, D, Htp, CH, n_ch,
                              mm_dtype if use_cast else None, slice_out, approx_gelu)

        if weight_bufs == 1:
            def wspec(w):   # invariant across the grid -> single buffer
                return pl.BlockSpec(w.shape, lambda b: (0, 0),
                                    pipeline_mode=pl.Buffered(1))
        else:
            def wspec(w):
                return pl.BlockSpec(w.shape, lambda b: (0, 0))

        in_specs = [pl.BlockSpec((tb_, Np, Dp), lambda b: (b, 0, 0))] + \
                   [wspec(w) for w in weights]

        vmem_limit = int(min(max(int(need(tb_, weight_bufs) * 1.5) + (4 << 20),
                                 32 << 20), cap))

        return pl.pallas_call(
            kernel,
            out_shape=jax.ShapeDtypeStruct((B, N, D), x.dtype),
            grid=(B // tb_,),
            in_specs=in_specs,
            out_specs=pl.BlockSpec((tb_, N, D), lambda b: (b, 0, 0)),
            scratch_shapes=[pltpu.VMEM((tb_ * Np, Dp), jnp.float32)],
            compiler_params=pltpu.CompilerParams(
                dimension_semantics=("parallel",),
                vmem_limit_bytes=vmem_limit),
        )(xp, *weights)

    try:
        return build_and_call(1)        # single-buffered invariant weights
    except Exception:
        return build_and_call(2)        # fallback: default double-buffering


def init_mixer_params(key, per_graph_size, dims,
                      token_expansion_factor=0.5, channel_expansion_factor=4):
    """Deterministic init mirroring nn.Linear.reset_parameters (uniform +-1/sqrt(fan_in))
    and nn.LayerNorm (gamma=1, beta=0).  Linear weight shape is (out, in)."""
    def linear(k, fan_in, fan_out):
        k1, k2 = jax.random.split(k)
        bound = 1.0 / math.sqrt(fan_in)
        W = jax.random.uniform(k1, (fan_out, fan_in), jnp.float32, -bound, bound)
        b = jax.random.uniform(k2, (1, fan_out), jnp.float32, -bound, bound)
        return W, b

    ht = int(token_expansion_factor * per_graph_size)
    hc = int(channel_expansion_factor * dims)
    k0, k1, k2, k3 = jax.random.split(key, 4)

    tw0, tb0 = linear(k0, per_graph_size, ht)   # token FF layer 0: N -> Ht
    tw1, tb1 = linear(k1, ht, per_graph_size)   # token FF layer 1: Ht -> N
    cw0, cb0 = linear(k2, dims, hc)             # channel FF layer 0: D -> Hc
    cw1, cb1 = linear(k3, hc, dims)             # channel FF layer 1: Hc -> D

    return {
        "tln_g": jnp.ones((1, dims), jnp.float32),
        "tln_b": jnp.zeros((1, dims), jnp.float32),
        "tw0": tw0, "tb0": tb0, "tw1": tw1, "tb1": tb1,
        "cln_g": jnp.ones((1, dims), jnp.float32),
        "cln_b": jnp.zeros((1, dims), jnp.float32),
        "cw0": cw0, "cb0": cb0, "cw1": cw1, "cb1": cb1,
    }


def mixer_block_ref(x, p):
    """Pure-JAX reference for correctness checking."""
    def ln(v, g, b):
        m = jnp.mean(v, -1, keepdims=True)
        var = jnp.mean((v - m) ** 2, -1, keepdims=True)
        return (v - m) * lax.rsqrt(var + EPS) * g + b

    def gelu(v):
        return 0.5 * v * (1.0 + lax.erf(v / jnp.sqrt(2.0)))

    # token mixer
    y = ln(x, p["tln_g"], p["tln_b"]).transpose(0, 2, 1)           # (B, D, N)
    y = gelu(jnp.einsum("bdn,hn->bdh", y, p["tw0"]) + p["tb0"])
    y = (jnp.einsum("bdh,nh->bdn", y, p["tw1"]) + p["tb1"]).transpose(0, 2, 1)
    x = x + y
    # channel mixer
    y = ln(x, p["cln_g"], p["cln_b"])
    y = gelu(jnp.einsum("bnd,hd->bnh", y, p["cw0"]) + p["cb0"])
    y = jnp.einsum("bnh,dh->bnd", y, p["cw1"]) + p["cb1"]
    return x + y


if __name__ == "__main__":
    # TODO(synk): dropout is inference-mode (identity), matching module.eval().
    key = jax.random.PRNGKey(0)

    # ---- config 1: B=2, N=8 tokens, D=32 channels (aligned tokens, padded lanes) ----
    B, N, D = 2, 8, 32
    kx, kp, kx2, kp2 = jax.random.split(key, 4)
    x = jax.random.normal(kx, (B, N, D), jnp.float32)
    params = init_mixer_params(kp, per_graph_size=N, dims=D,
                               token_expansion_factor=0.5,
                               channel_expansion_factor=4)
    ref = mixer_block_ref(x, params)

    # f32 matmuls: strict check
    out = jax.block_until_ready(mixer_block(x, params, matmul_dtype=None))
    assert out.shape == (B, N, D)
    assert jnp.allclose(out, ref, atol=1e-4, rtol=1e-4), \
        f"f32 max abs err {jnp.max(jnp.abs(out - ref))}"

    # bf16 MXU inputs (f32 accumulation / f32 elementwise): loose check
    out_bf16 = jax.block_until_ready(
        mixer_block(x, params, matmul_dtype=jnp.bfloat16))
    assert jnp.allclose(out_bf16, ref, atol=5e-2, rtol=5e-2), \
        f"bf16 max abs err {jnp.max(jnp.abs(out_bf16 - ref))}"

    # ---- config 2: B=3, N=6, D=20 — exercises token/lane padding + odd grid ----
    B2, N2, D2 = 3, 6, 20
    x2 = jax.random.normal(kx2, (B2, N2, D2), jnp.float32)
    params2 = init_mixer_params(kp2, per_graph_size=N2, dims=D2,
                                token_expansion_factor=0.5,
                                channel_expansion_factor=4)
    ref2 = mixer_block_ref(x2, params2)
    out2 = jax.block_until_ready(mixer_block(x2, params2, matmul_dtype=None))
    assert out2.shape == (B2, N2, D2)
    assert jnp.allclose(out2, ref2, atol=1e-4, rtol=1e-4), \
        f"padded-case max abs err {jnp.max(jnp.abs(out2 - ref2))}"

    print("KERNEL_OK")
</pallas_src>

<mosaic_0001>
module attributes {stable_mosaic.version = 11 : i64} {
  func.func @kernel(%arg0: i32, %arg1: memref<1x8x128xf32, #tpu.memory_space<vmem>>, %arg2: memref<1x128xf32, #tpu.memory_space<vmem>>, %arg3: memref<1x128xf32, #tpu.memory_space<vmem>>, %arg4: memref<8x8xf32, #tpu.memory_space<vmem>>, %arg5: memref<8x1xf32, #tpu.memory_space<vmem>>, %arg6: memref<8x8xf32, #tpu.memory_space<vmem>>, %arg7: memref<8x1xf32, #tpu.memory_space<vmem>>, %arg8: memref<1x128xf32, #tpu.memory_space<vmem>>, %arg9: memref<1x128xf32, #tpu.memory_space<vmem>>, %arg10: memref<128x128xf32, #tpu.memory_space<vmem>>, %arg11: memref<1x128xf32, #tpu.memory_space<vmem>>, %arg12: memref<128x128xf32, #tpu.memory_space<vmem>>, %arg13: memref<1x128xf32, #tpu.memory_space<vmem>>, %arg14: memref<1x8x32xf32, #tpu.memory_space<vmem>>, %arg15: memref<8x128xf32, #tpu.memory_space<vmem>>) attributes {dimension_semantics = [#tpu.dimension_semantics<parallel>], iteration_bounds = array<i64: 2>, scalar_prefetch = 0 : i64, scratch_operands = 1 : i64, tpu.core_type = #tpu.core_type<tc>, window_params = [{transform_indices = @transform_0, window_bounds = array<i64: 1, 8, 128>}, {pipeline_mode = #tpu.pipeline_mode<synchronous>, transform_indices = @transform_1, window_bounds = array<i64: 1, 128>}, {pipeline_mode = #tpu.pipeline_mode<synchronous>, transform_indices = @transform_2, window_bounds = array<i64: 1, 128>}, {pipeline_mode = #tpu.pipeline_mode<synchronous>, transform_indices = @transform_3, window_bounds = array<i64: 8, 8>}, {pipeline_mode = #tpu.pipeline_mode<synchronous>, transform_indices = @transform_4, window_bounds = array<i64: 8, 1>}, {pipeline_mode = #tpu.pipeline_mode<synchronous>, transform_indices = @transform_5, window_bounds = array<i64: 8, 8>}, {pipeline_mode = #tpu.pipeline_mode<synchronous>, transform_indices = @transform_6, window_bounds = array<i64: 8, 1>}, {pipeline_mode = #tpu.pipeline_mode<synchronous>, transform_indices = @transform_7, window_bounds = array<i64: 1, 128>}, {pipeline_mode = #tpu.pipeline_mode<synchronous>, transform_indices = @transform_8, window_bounds = array<i64: 1, 128>}, {pipeline_mode = #tpu.pipeline_mode<synchronous>, transform_indices = @transform_9, window_bounds = array<i64: 128, 128>}, {pipeline_mode = #tpu.pipeline_mode<synchronous>, transform_indices = @transform_10, window_bounds = array<i64: 1, 128>}, {pipeline_mode = #tpu.pipeline_mode<synchronous>, transform_indices = @transform_11, window_bounds = array<i64: 128, 128>}, {pipeline_mode = #tpu.pipeline_mode<synchronous>, transform_indices = @transform_12, window_bounds = array<i64: 1, 128>}, {transform_indices = @transform_13, window_bounds = array<i64: 1, 8, 32>}]} {
    %0 = tpu.iota {dimensions = array<i32: 1>} : vector<1x128xi32>
    %c32_i32 = arith.constant 32 : i32
    %1 = vector.broadcast %c32_i32 : i32 to vector<1x128xi32>
    %2 = arith.cmpi slt, %0, %1 : vector<1x128xi32>
    %3 = arith.extui %2 : vector<1x128xi1> to vector<1x128xi32>
    %4 = arith.sitofp %3 : vector<1x128xi32> to vector<1x128xf32>
    %c0 = arith.constant 0 : index
    %c0_0 = arith.constant 0 : index
    %c0_1 = arith.constant 0 : index
    %5 = vector.load %arg1[%c0, %c0_0, %c0_1] : memref<1x8x128xf32, #tpu.memory_space<vmem>>, vector<1x8x128xf32>
    %6 = vector.shape_cast %5 : vector<1x8x128xf32> to vector<8x128xf32>
    %c0_2 = arith.constant 0 : index
    %c0_3 = arith.constant 0 : index
    %7 = vector.load %arg2[%c0_2, %c0_3] : memref<1x128xf32, #tpu.memory_space<vmem>>, vector<1x128xf32>
    %c0_4 = arith.constant 0 : index
    %c0_5 = arith.constant 0 : index
    %8 = vector.load %arg3[%c0_4, %c0_5] : memref<1x128xf32, #tpu.memory_space<vmem>>, vector<1x128xf32>
    %cst = arith.constant dense<0.000000e+00> : vector<8xf32>
    %9 = vector.multi_reduction <add>, %6, %cst [1] : vector<8x128xf32> to vector<8xf32>
    %10 = vector.shape_cast %9 : vector<8xf32> to vector<8x1xf32>
    %cst_6 = arith.constant 3.125000e-02 : f32
    %11 = vector.broadcast %cst_6 : f32 to vector<8x1xf32>
    %12 = arith.mulf %10, %11 : vector<8x1xf32>
    %13 = vector.broadcast %12 : vector<8x1xf32> to vector<8x128xf32>
    %14 = arith.subf %6, %13 : vector<8x128xf32>
    %15 = vector.broadcast %4 : vector<1x128xf32> to vector<8x128xf32>
    %16 = arith.mulf %14, %15 : vector<8x128xf32>
    %17 = arith.mulf %16, %16 : vector<8x128xf32>
    %cst_7 = arith.constant dense<0.000000e+00> : vector<8xf32>
    %18 = vector.multi_reduction <add>, %17, %cst_7 [1] : vector<8x128xf32> to vector<8xf32>
    %19 = vector.shape_cast %18 : vector<8xf32> to vector<8x1xf32>
    %cst_8 = arith.constant 3.125000e-02 : f32
    %20 = vector.broadcast %cst_8 : f32 to vector<8x1xf32>
    %21 = arith.mulf %19, %20 : vector<8x1xf32>
    %cst_9 = arith.constant 9.99999974E-6 : f32
    %22 = vector.broadcast %cst_9 : f32 to vector<8x1xf32>
    %23 = arith.addf %21, %22 : vector<8x1xf32>
    %24 = math.rsqrt %23 : vector<8x1xf32>
    %25 = vector.broadcast %24 : vector<8x1xf32> to vector<8x128xf32>
    %26 = arith.mulf %16, %25 : vector<8x128xf32>
    %27 = vector.broadcast %7 : vector<1x128xf32> to vector<8x128xf32>
    %28 = arith.mulf %26, %27 : vector<8x128xf32>
    %29 = vector.broadcast %8 : vector<1x128xf32> to vector<8x128xf32>
    %30 = arith.addf %28, %29 : vector<8x128xf32>
    %c0_10 = arith.constant 0 : index
    %c0_11 = arith.constant 0 : index
    %31 = vector.load %arg4[%c0_10, %c0_11] : memref<8x8xf32, #tpu.memory_space<vmem>>, vector<8x8xf32>
    %c0_12 = arith.constant 0 : index
    %c0_13 = arith.constant 0 : index
    %32 = vector.load %arg6[%c0_12, %c0_13] : memref<8x8xf32, #tpu.memory_space<vmem>>, vector<8x8xf32>
    %c0_14 = arith.constant 0 : index
    %c0_15 = arith.constant 0 : index
    %33 = vector.load %arg5[%c0_14, %c0_15] : memref<8x1xf32, #tpu.memory_space<vmem>>, vector<8x1xf32>
    %34 = vector.shape_cast %33 : vector<8x1xf32> to vector<8x1xf32>
    %35 = vector.broadcast %34 : vector<8x1xf32> to vector<8x128xf32>
    %c0_16 = arith.constant 0 : index
    %c0_17 = arith.constant 0 : index
    %36 = vector.load %arg7[%c0_16, %c0_17] : memref<8x1xf32, #tpu.memory_space<vmem>>, vector<8x1xf32>
    %37 = vector.shape_cast %36 : vector<8x1xf32> to vector<8x1xf32>
    %38 = vector.broadcast %37 : vector<8x1xf32> to vector<8x128xf32>
    %cst_18 = arith.constant dense<0.000000e+00> : vector<8x128xf32>
    %39 = tpu.matmul %31, %30, %cst_18 {dimension_numbers = #tpu.dot_dimension_numbers<[1], [0], [0], [1], [0, 0, 1, 1], [], []>} : vector<8x8xf32>, vector<8x128xf32>, vector<8x128xf32> -> vector<8x128xf32>
    %40 = arith.addf %39, %35 : vector<8x128xf32>
    %cst_19 = arith.constant 5.000000e-01 : f32
    %41 = vector.broadcast %cst_19 : f32 to vector<8x128xf32>
    %42 = arith.mulf %41, %40 : vector<8x128xf32>
    %cst_20 = arith.constant 0.707106769 : f32
    %43 = vector.broadcast %cst_20 : f32 to vector<8x128xf32>
    %44 = arith.mulf %40, %43 : vector<8x128xf32>
    %45 = math.erf %44 : vector<8x128xf32>
    %cst_21 = arith.constant 1.000000e+00 : f32
    %46 = vector.broadcast %cst_21 : f32 to vector<8x128xf32>
    %47 = arith.addf %46, %45 : vector<8x128xf32>
    %48 = arith.mulf %42, %47 : vector<8x128xf32>
    %cst_22 = arith.constant dense<0.000000e+00> : vector<8x128xf32>
    %49 = tpu.matmul %32, %48, %cst_22 {dimension_numbers = #tpu.dot_dimension_numbers<[1], [0], [0], [1], [0, 0, 1, 1], [], []>} : vector<8x8xf32>, vector<8x128xf32>, vector<8x128xf32> -> vector<8x128xf32>
    %50 = arith.addf %49, %38 : vector<8x128xf32>
    %51 = vector.broadcast %4 : vector<1x128xf32> to vector<8x128xf32>
    %52 = arith.mulf %50, %51 : vector<8x128xf32>
    %53 = arith.addf %6, %52 : vector<8x128xf32>
    %c0_23 = arith.constant 0 : index
    %c0_24 = arith.constant 0 : index
    %54 = vector.load %arg15[%c0_23, %c0_24] : memref<8x128xf32, #tpu.memory_space<vmem>>, vector<8x128xf32>
    tpu.vector_store %arg15[%c0_23, %c0_24], %53 {strides = array<i32>} : memref<8x128xf32, #tpu.memory_space<vmem>>, vector<8x128xf32>,
    %c0_25 = arith.constant 0 : index
    %c0_26 = arith.constant 0 : index
    %55 = vector.load %arg15[%c0_25, %c0_26] : memref<8x128xf32, #tpu.memory_space<vmem>>, vector<8x128xf32>
    %c0_27 = arith.constant 0 : index
    %c0_28 = arith.constant 0 : index
    %56 = vector.load %arg8[%c0_27, %c0_28] : memref<1x128xf32, #tpu.memory_space<vmem>>, vector<1x128xf32>
    %c0_29 = arith.constant 0 : index
    %c0_30 = arith.constant 0 : index
    %57 = vector.load %arg9[%c0_29, %c0_30] : memref<1x128xf32, #tpu.memory_space<vmem>>, vector<1x128xf32>
    %cst_31 = arith.constant dense<0.000000e+00> : vector<8xf32>
    %58 = vector.multi_reduction <add>, %55, %cst_31 [1] : vector<8x128xf32> to vector<8xf32>
    %59 = vector.shape_cast %58 : vector<8xf32> to vector<8x1xf32>
    %cst_32 = arith.constant 3.125000e-02 : f32
    %60 = vector.broadcast %cst_32 : f32 to vector<8x1xf32>
    %61 = arith.mulf %59, %60 : vector<8x1xf32>
    %62 = vector.broadcast %61 : vector<8x1xf32> to vector<8x128xf32>
    %63 = arith.subf %55, %62 : vector<8x128xf32>
    %64 = vector.broadcast %4 : vector<1x128xf32> to vector<8x128xf32>
    %65 = arith.mulf %63, %64 : vector<8x128xf32>
    %66 = arith.mulf %65, %65 : vector<8x128xf32>
    %cst_33 = arith.constant dense<0.000000e+00> : vector<8xf32>
    %67 = vector.multi_reduction <add>, %66, %cst_33 [1] : vector<8x128xf32> to vector<8xf32>
    %68 = vector.shape_cast %67 : vector<8xf32> to vector<8x1xf32>
    %cst_34 = arith.constant 3.125000e-02 : f32
    %69 = vector.broadcast %cst_34 : f32 to vector<8x1xf32>
    %70 = arith.mulf %68, %69 : vector<8x1xf32>
    %cst_35 = arith.constant 9.99999974E-6 : f32
    %71 = vector.broadcast %cst_35 : f32 to vector<8x1xf32>
    %72 = arith.addf %70, %71 : vector<8x1xf32>
    %73 = math.rsqrt %72 : vector<8x1xf32>
    %74 = vector.broadcast %73 : vector<8x1xf32> to vector<8x128xf32>
    %75 = arith.mulf %65, %74 : vector<8x128xf32>
    %76 = vector.broadcast %56 : vector<1x128xf32> to vector<8x128xf32>
    %77 = arith.mulf %75, %76 : vector<8x128xf32>
    %78 = vector.broadcast %57 : vector<1x128xf32> to vector<8x128xf32>
    %79 = arith.addf %77, %78 : vector<8x128xf32>
    %c0_36 = arith.constant 0 : index
    %c0_37 = arith.constant 0 : index
    %80 = vector.load %arg13[%c0_36, %c0_37] : memref<1x128xf32, #tpu.memory_space<vmem>>, vector<1x128xf32>
    %81 = vector.shape_cast %80 : vector<1x128xf32> to vector<1x128xf32>
    %82 = vector.broadcast %81 : vector<1x128xf32> to vector<8x128xf32>
    %c0_38 = arith.constant 0 : index
    %c0_39 = arith.constant 0 : index
    %83 = vector.load %arg10[%c0_38, %c0_39] : memref<128x128xf32, #tpu.memory_space<vmem>>, vector<128x128xf32>
    %cst_40 = arith.constant dense<0.000000e+00> : vector<8x128xf32>
    %84 = tpu.matmul %79, %83, %cst_40 {dimension_numbers = #tpu.dot_dimension_numbers<[1], [0], [0], [1], [0, 0, 1, 1], [], []>} : vector<8x128xf32>, vector<128x128xf32>, vector<8x128xf32> -> vector<8x128xf32>
    %c0_41 = arith.constant 0 : index
    %c0_42 = arith.constant 0 : index
    %85 = vector.load %arg11[%c0_41, %c0_42] : memref<1x128xf32, #tpu.memory_space<vmem>>, vector<1x128xf32>
    %86 = vector.broadcast %85 : vector<1x128xf32> to vector<8x128xf32>
    %87 = arith.addf %84, %86 : vector<8x128xf32>
    %cst_43 = arith.constant 5.000000e-01 : f32
    %88 = vector.broadcast %cst_43 : f32 to vector<8x128xf32>
    %89 = arith.mulf %88, %87 : vector<8x128xf32>
    %cst_44 = arith.constant 0.707106769 : f32
    %90 = vector.broadcast %cst_44 : f32 to vector<8x128xf32>
    %91 = arith.mulf %87, %90 : vector<8x128xf32>
    %92 = math.erf %91 : vector<8x128xf32>
    %cst_45 = arith.constant 1.000000e+00 : f32
    %93 = vector.broadcast %cst_45 : f32 to vector<8x128xf32>
    %94 = arith.addf %93, %92 : vector<8x128xf32>
    %95 = arith.mulf %89, %94 : vector<8x128xf32>
    %c0_46 = arith.constant 0 : index
    %c0_47 = arith.constant 0 : index
    %96 = vector.load %arg12[%c0_46, %c0_47] : memref<128x128xf32, #tpu.memory_space<vmem>>, vector<128x128xf32>
    %cst_48 = arith.constant dense<0.000000e+00> : vector<8x128xf32>
    %97 = tpu.matmul %95, %96, %cst_48 {dimension_numbers = #tpu.dot_dimension_numbers<[1], [0], [0], [1], [0, 0, 1, 1], [], []>} : vector<8x128xf32>, vector<128x128xf32>, vector<8x128xf32> -> vector<8x128xf32>
    %98 = arith.addf %82, %97 : vector<8x128xf32>
    %99 = arith.addf %55, %98 : vector<8x128xf32>
    %100 = vector.shape_cast %99 : vector<8x128xf32> to vector<1x8x128xf32>
    %101 = vector.extract_strided_slice %100 {offsets = [0, 0, 0], sizes = [1, 8, 32], strides = [1, 1, 1]} : vector<1x8x128xf32> to vector<1x8x32xf32>
    %c0_49 = arith.constant 0 : index
    %c0_50 = arith.constant 0 : index
    %c0_51 = arith.constant 0 : index
    %102 = vector.load %arg14[%c0_49, %c0_50, %c0_51] : memref<1x8x32xf32, #tpu.memory_space<vmem>>, vector<1x8x32xf32>
    tpu.vector_store %arg14[%c0_49, %c0_50, %c0_51], %101 {strides = array<i32>} : memref<1x8x32xf32, #tpu.memory_space<vmem>>, vector<1x8x32xf32>,
    return
  }
  func.func @transform_0(%arg0: i32) -> (i32, i32, i32) {
    %c0_i32 = arith.constant 0 : i32
    %c0_i32_0 = arith.constant 0 : i32
    %c0_i32_1 = arith.constant 0 : i32
    return %arg0, %c0_i32, %c0_i32_0 : i32, i32, i32
  }
  func.func @transform_1(%arg0: i32) -> (i32, i32) {
    %c0_i32 = arith.constant 0 : i32
    %c0_i32_0 = arith.constant 0 : i32
    %c0_i32_1 = arith.constant 0 : i32
    return %c0_i32, %c0_i32_0 : i32, i32
  }
  func.func @transform_2(%arg0: i32) -> (i32, i32) {
    %c0_i32 = arith.constant 0 : i32
    %c0_i32_0 = arith.constant 0 : i32
    %c0_i32_1 = arith.constant 0 : i32
    return %c0_i32, %c0_i32_0 : i32, i32
  }
  func.func @transform_3(%arg0: i32) -> (i32, i32) {
    %c0_i32 = arith.constant 0 : i32
    %c0_i32_0 = arith.constant 0 : i32
    %c0_i32_1 = arith.constant 0 : i32
    return %c0_i32, %c0_i32_0 : i32, i32
  }
  func.func @transform_4(%arg0: i32) -> (i32, i32) {
    %c0_i32 = arith.constant 0 : i32
    %c0_i32_0 = arith.constant 0 : i32
    %c0_i32_1 = arith.constant 0 : i32
    return %c0_i32, %c0_i32_0 : i32, i32
  }
  func.func @transform_5(%arg0: i32) -> (i32, i32) {
    %c0_i32 = arith.constant 0 : i32
    %c0_i32_0 = arith.constant 0 : i32
    %c0_i32_1 = arith.constant 0 : i32
    return %c0_i32, %c0_i32_0 : i32, i32
  }
  func.func @transform_6(%arg0: i32) -> (i32, i32) {
    %c0_i32 = arith.constant 0 : i32
    %c0_i32_0 = arith.constant 0 : i32
    %c0_i32_1 = arith.constant 0 : i32
    return %c0_i32, %c0_i32_0 : i32, i32
  }
  func.func @transform_7(%arg0: i32) -> (i32, i32) {
    %c0_i32 = arith.constant 0 : i32
    %c0_i32_0 = arith.constant 0 : i32
    %c0_i32_1 = arith.constant 0 : i32
    return %c0_i32, %c0_i32_0 : i32, i32
  }
  func.func @transform_8(%arg0: i32) -> (i32, i32) {
    %c0_i32 = arith.constant 0 : i32
    %c0_i32_0 = arith.constant 0 : i32
    %c0_i32_1 = arith.constant 0 : i32
    return %c0_i32, %c0_i32_0 : i32, i32
  }
  func.func @transform_9(%arg0: i32) -> (i32, i32) {
    %c0_i32 = arith.constant 0 : i32
    %c0_i32_0 = arith.constant 0 : i32
    %c0_i32_1 = arith.constant 0 : i32
    return %c0_i32, %c0_i32_0 : i32, i32
  }
  func.func @transform_10(%arg0: i32) -> (i32, i32) {
    %c0_i32 = arith.constant 0 : i32
    %c0_i32_0 = arith.constant 0 : i32
    %c0_i32_1 = arith.constant 0 : i32
    return %c0_i32, %c0_i32_0 : i32, i32
  }
  func.func @transform_11(%arg0: i32) -> (i32, i32) {
    %c0_i32 = arith.constant 0 : i32
    %c0_i32_0 = arith.constant 0 : i32
    %c0_i32_1 = arith.constant 0 : i32
    return %c0_i32, %c0_i32_0 : i32, i32
  }
  func.func @transform_12(%arg0: i32) -> (i32, i32) {
    %c0_i32 = arith.constant 0 : i32
    %c0_i32_0 = arith.constant 0 : i32
    %c0_i32_1 = arith.constant 0 : i32
    return %c0_i32, %c0_i32_0 : i32, i32
  }
  func.func @transform_13(%arg0: i32) -> (i32, i32, i32) {
    %c0_i32 = arith.constant 0 : i32
    %c0_i32_0 = arith.constant 0 : i32
    %c0_i32_1 = arith.constant 0 : i32
    return %arg0, %c0_i32, %c0_i32_0 : i32, i32, i32
  }
}

module attributes {stable_mosaic.version = 11 : i64} {
  func.func @kernel(%arg0: i32, %arg1: memref<1x8x128xf32, #tpu.memory_space<vmem>>, %arg2: memref<1x128xf32, #tpu.memory_space<vmem>>, %arg3: memref<1x128xf32, #tpu.memory_space<vmem>>, %arg4: memref<8x8xf32, #tpu.memory_space<vmem>>, %arg5: memref<8x1xf32, #tpu.memory_space<vmem>>, %arg6: memref<8x8xf32, #tpu.memory_space<vmem>>, %arg7: memref<8x1xf32, #tpu.memory_space<vmem>>, %arg8: memref<1x128xf32, #tpu.memory_space<vmem>>, %arg9: memref<1x128xf32, #tpu.memory_space<vmem>>, %arg10: memref<128x128xf32, #tpu.memory_space<vmem>>, %arg11: memref<1x128xf32, #tpu.memory_space<vmem>>, %arg12: memref<128x128xf32, #tpu.memory_space<vmem>>, %arg13: memref<1x128xf32, #tpu.memory_space<vmem>>, %arg14: memref<1x8x32xf32, #tpu.memory_space<vmem>>, %arg15: memref<8x128xf32, #tpu.memory_space<vmem>>) attributes {dimension_semantics = [#tpu.dimension_semantics<parallel>], iteration_bounds = array<i64: 2>, scalar_prefetch = 0 : i64, scratch_operands = 1 : i64, tpu.core_type = #tpu.core_type<tc>, window_params = [{transform_indices = @transform_0, window_bounds = array<i64: 1, 8, 128>}, {pipeline_mode = #tpu.pipeline_mode<synchronous>, transform_indices = @transform_1, window_bounds = array<i64: 1, 128>}, {pipeline_mode = #tpu.pipeline_mode<synchronous>, transform_indices = @transform_2, window_bounds = array<i64: 1, 128>}, {pipeline_mode = #tpu.pipeline_mode<synchronous>, transform_indices = @transform_3, window_bounds = array<i64: 8, 8>}, {pipeline_mode = #tpu.pipeline_mode<synchronous>, transform_indices = @transform_4, window_bounds = array<i64: 8, 1>}, {pipeline_mode = #tpu.pipeline_mode<synchronous>, transform_indices = @transform_5, window_bounds = array<i64: 8, 8>}, {pipeline_mode = #tpu.pipeline_mode<synchronous>, transform_indices = @transform_6, window_bounds = array<i64: 8, 1>}, {pipeline_mode = #tpu.pipeline_mode<synchronous>, transform_indices = @transform_7, window_bounds = array<i64: 1, 128>}, {pipeline_mode = #tpu.pipeline_mode<synchronous>, transform_indices = @transform_8, window_bounds = array<i64: 1, 128>}, {pipeline_mode = #tpu.pipeline_mode<synchronous>, transform_indices = @transform_9, window_bounds = array<i64: 128, 128>}, {pipeline_mode = #tpu.pipeline_mode<synchronous>, transform_indices = @transform_10, window_bounds = array<i64: 1, 128>}, {pipeline_mode = #tpu.pipeline_mode<synchronous>, transform_indices = @transform_11, window_bounds = array<i64: 128, 128>}, {pipeline_mode = #tpu.pipeline_mode<synchronous>, transform_indices = @transform_12, window_bounds = array<i64: 1, 128>}, {transform_indices = @transform_13, window_bounds = array<i64: 1, 8, 32>}]} {
    %0 = tpu.iota {dimensions = array<i32: 1>} : vector<1x128xi32>
    %c32_i32 = arith.constant 32 : i32
    %1 = vector.broadcast %c32_i32 : i32 to vector<1x128xi32>
    %2 = arith.cmpi slt, %0, %1 : vector<1x128xi32>
    %3 = arith.extui %2 : vector<1x128xi1> to vector<1x128xi32>
    %4 = arith.sitofp %3 : vector<1x128xi32> to vector<1x128xf32>
    %c0 = arith.constant 0 : index
    %c0_0 = arith.constant 0 : index
    %c0_1 = arith.constant 0 : index
    %5 = vector.load %arg1[%c0, %c0_0, %c0_1] : memref<1x8x128xf32, #tpu.memory_space<vmem>>, vector<1x8x128xf32>
    %6 = vector.shape_cast %5 : vector<1x8x128xf32> to vector<8x128xf32>
    %c0_2 = arith.constant 0 : index
    %c0_3 = arith.constant 0 : index
    %7 = vector.load %arg2[%c0_2, %c0_3] : memref<1x128xf32, #tpu.memory_space<vmem>>, vector<1x128xf32>
    %c0_4 = arith.constant 0 : index
    %c0_5 = arith.constant 0 : index
    %8 = vector.load %arg3[%c0_4, %c0_5] : memref<1x128xf32, #tpu.memory_space<vmem>>, vector<1x128xf32>
    %cst = arith.constant dense<0.000000e+00> : vector<8xf32>
    %9 = vector.multi_reduction <add>, %6, %cst [1] : vector<8x128xf32> to vector<8xf32>
    %10 = vector.shape_cast %9 : vector<8xf32> to vector<8x1xf32>
    %cst_6 = arith.constant 3.125000e-02 : f32
    %11 = vector.broadcast %cst_6 : f32 to vector<8x1xf32>
    %12 = arith.mulf %10, %11 : vector<8x1xf32>
    %13 = vector.broadcast %12 : vector<8x1xf32> to vector<8x128xf32>
    %14 = arith.subf %6, %13 : vector<8x128xf32>
    %15 = vector.broadcast %4 : vector<1x128xf32> to vector<8x128xf32>
    %16 = arith.mulf %14, %15 : vector<8x128xf32>
    %17 = arith.mulf %16, %16 : vector<8x128xf32>
    %cst_7 = arith.constant dense<0.000000e+00> : vector<8xf32>
    %18 = vector.multi_reduction <add>, %17, %cst_7 [1] : vector<8x128xf32> to vector<8xf32>
    %19 = vector.shape_cast %18 : vector<8xf32> to vector<8x1xf32>
    %cst_8 = arith.constant 3.125000e-02 : f32
    %20 = vector.broadcast %cst_8 : f32 to vector<8x1xf32>
    %21 = arith.mulf %19, %20 : vector<8x1xf32>
    %cst_9 = arith.constant 9.99999974E-6 : f32
    %22 = vector.broadcast %cst_9 : f32 to vector<8x1xf32>
    %23 = arith.addf %21, %22 : vector<8x1xf32>
    %24 = math.rsqrt %23 : vector<8x1xf32>
    %25 = vector.broadcast %24 : vector<8x1xf32> to vector<8x128xf32>
    %26 = arith.mulf %16, %25 : vector<8x128xf32>
    %27 = vector.broadcast %7 : vector<1x128xf32> to vector<8x128xf32>
    %28 = arith.mulf %26, %27 : vector<8x128xf32>
    %29 = vector.broadcast %8 : vector<1x128xf32> to vector<8x128xf32>
    %30 = arith.addf %28, %29 : vector<8x128xf32>
    %c0_10 = arith.constant 0 : index
    %c0_11 = arith.constant 0 : index
    %31 = vector.load %arg4[%c0_10, %c0_11] : memref<8x8xf32, #tpu.memory_space<vmem>>, vector<8x8xf32>
    %c0_12 = arith.constant 0 : index
    %c0_13 = arith.constant 0 : index
    %32 = vector.load %arg6[%c0_12, %c0_13] : memref<8x8xf32, #tpu.memory_space<vmem>>, vector<8x8xf32>
    %c0_14 = arith.constant 0 : index
    %c0_15 = arith.constant 0 : index
    %33 = vector.load %arg5[%c0_14, %c0_15] : memref<8x1xf32, #tpu.memory_space<vmem>>, vector<8x1xf32>
    %34 = vector.shape_cast %33 : vector<8x1xf32> to vector<8x1xf32>
    %35 = vector.broadcast %34 : vector<8x1xf32> to vector<8x128xf32>
    %c0_16 = arith.constant 0 : index
    %c0_17 = arith.constant 0 : index
    %36 = vector.load %arg7[%c0_16, %c0_17] : memref<8x1xf32, #tpu.memory_space<vmem>>, vector<8x1xf32>
    %37 = vector.shape_cast %36 : vector<8x1xf32> to vector<8x1xf32>
    %38 = vector.broadcast %37 : vector<8x1xf32> to vector<8x128xf32>
    %cst_18 = arith.constant dense<0.000000e+00> : vector<8x128xf32>
    %39 = tpu.matmul %31, %30, %cst_18 {dimension_numbers = #tpu.dot_dimension_numbers<[1], [0], [0], [1], [0, 0, 1, 1], [], []>} : vector<8x8xf32>, vector<8x128xf32>, vector<8x128xf32> -> vector<8x128xf32>
    %40 = arith.addf %39, %35 : vector<8x128xf32>
    %cst_19 = arith.constant 5.000000e-01 : f32
    %41 = vector.broadcast %cst_19 : f32 to vector<8x128xf32>
    %42 = arith.mulf %41, %40 : vector<8x128xf32>
    %cst_20 = arith.constant 0.707106769 : f32
    %43 = vector.broadcast %cst_20 : f32 to vector<8x128xf32>
    %44 = arith.mulf %40, %43 : vector<8x128xf32>
    %45 = math.erf %44 : vector<8x128xf32>
    %cst_21 = arith.constant 1.000000e+00 : f32
    %46 = vector.broadcast %cst_21 : f32 to vector<8x128xf32>
    %47 = arith.addf %46, %45 : vector<8x128xf32>
    %48 = arith.mulf %42, %47 : vector<8x128xf32>
    %cst_22 = arith.constant dense<0.000000e+00> : vector<8x128xf32>
    %49 = tpu.matmul %32, %48, %cst_22 {dimension_numbers = #tpu.dot_dimension_numbers<[1], [0], [0], [1], [0, 0, 1, 1], [], []>} : vector<8x8xf32>, vector<8x128xf32>, vector<8x128xf32> -> vector<8x128xf32>
    %50 = arith.addf %49, %38 : vector<8x128xf32>
    %51 = vector.broadcast %4 : vector<1x128xf32> to vector<8x128xf32>
    %52 = arith.mulf %50, %51 : vector<8x128xf32>
    %53 = arith.addf %6, %52 : vector<8x128xf32>
    %c0_23 = arith.constant 0 : index
    %c0_24 = arith.constant 0 : index
    %54 = vector.load %arg15[%c0_23, %c0_24] : memref<8x128xf32, #tpu.memory_space<vmem>>, vector<8x128xf32>
    tpu.vector_store %arg15[%c0_23, %c0_24], %53 {strides = array<i32>} : memref<8x128xf32, #tpu.memory_space<vmem>>, vector<8x128xf32>,
    %c0_25 = arith.constant 0 : index
    %c0_26 = arith.constant 0 : index
    %55 = vector.load %arg15[%c0_25, %c0_26] : memref<8x128xf32, #tpu.memory_space<vmem>>, vector<8x128xf32>
    %c0_27 = arith.constant 0 : index
    %c0_28 = arith.constant 0 : index
    %56 = vector.load %arg8[%c0_27, %c0_28] : memref<1x128xf32, #tpu.memory_space<vmem>>, vector<1x128xf32>
    %c0_29 = arith.constant 0 : index
    %c0_30 = arith.constant 0 : index
    %57 = vector.load %arg9[%c0_29, %c0_30] : memref<1x128xf32, #tpu.memory_space<vmem>>, vector<1x128xf32>
    %cst_31 = arith.constant dense<0.000000e+00> : vector<8xf32>
    %58 = vector.multi_reduction <add>, %55, %cst_31 [1] : vector<8x128xf32> to vector<8xf32>
    %59 = vector.shape_cast %58 : vector<8xf32> to vector<8x1xf32>
    %cst_32 = arith.constant 3.125000e-02 : f32
    %60 = vector.broadcast %cst_32 : f32 to vector<8x1xf32>
    %61 = arith.mulf %59, %60 : vector<8x1xf32>
    %62 = vector.broadcast %61 : vector<8x1xf32> to vector<8x128xf32>
    %63 = arith.subf %55, %62 : vector<8x128xf32>
    %64 = vector.broadcast %4 : vector<1x128xf32> to vector<8x128xf32>
    %65 = arith.mulf %63, %64 : vector<8x128xf32>
    %66 = arith.mulf %65, %65 : vector<8x128xf32>
    %cst_33 = arith.constant dense<0.000000e+00> : vector<8xf32>
    %67 = vector.multi_reduction <add>, %66, %cst_33 [1] : vector<8x128xf32> to vector<8xf32>
    %68 = vector.shape_cast %67 : vector<8xf32> to vector<8x1xf32>
    %cst_34 = arith.constant 3.125000e-02 : f32
    %69 = vector.broadcast %cst_34 : f32 to vector<8x1xf32>
    %70 = arith.mulf %68, %69 : vector<8x1xf32>
    %cst_35 = arith.constant 9.99999974E-6 : f32
    %71 = vector.broadcast %cst_35 : f32 to vector<8x1xf32>
    %72 = arith.addf %70, %71 : vector<8x1xf32>
    %73 = math.rsqrt %72 : vector<8x1xf32>
    %74 = vector.broadcast %73 : vector<8x1xf32> to vector<8x128xf32>
    %75 = arith.mulf %65, %74 : vector<8x128xf32>
    %76 = vector.broadcast %56 : vector<1x128xf32> to vector<8x128xf32>
    %77 = arith.mulf %75, %76 : vector<8x128xf32>
    %78 = vector.broadcast %57 : vector<1x128xf32> to vector<8x128xf32>
    %79 = arith.addf %77, %78 : vector<8x128xf32>
    %c0_36 = arith.constant 0 : index
    %c0_37 = arith.constant 0 : index
    %80 = vector.load %arg13[%c0_36, %c0_37] : memref<1x128xf32, #tpu.memory_space<vmem>>, vector<1x128xf32>
    %81 = vector.shape_cast %80 : vector<1x128xf32> to vector<1x128xf32>
    %82 = vector.broadcast %81 : vector<1x128xf32> to vector<8x128xf32>
    %c0_38 = arith.constant 0 : index
    %c0_39 = arith.constant 0 : index
    %83 = vector.load %arg10[%c0_38, %c0_39] : memref<128x128xf32, #tpu.memory_space<vmem>>, vector<128x128xf32>
    %cst_40 = arith.constant dense<0.000000e+00> : vector<8x128xf32>
    %84 = tpu.matmul %79, %83, %cst_40 {dimension_numbers = #tpu.dot_dimension_numbers<[1], [0], [0], [1], [0, 0, 1, 1], [], []>} : vector<8x128xf32>, vector<128x128xf32>, vector<8x128xf32> -> vector<8x128xf32>
    %c0_41 = arith.constant 0 : index
    %c0_42 = arith.constant 0 : index
    %85 = vector.load %arg11[%c0_41, %c0_42] : memref<1x128xf32, #tpu.memory_space<vmem>>, vector<1x128xf32>
    %86 = vector.broadcast %85 : vector<1x128xf32> to vector<8x128xf32>
    %87 = arith.addf %84, %86 : vector<8x128xf32>
    %cst_43 = arith.constant 5.000000e-01 : f32
    %88 = vector.broadcast %cst_43 : f32 to vector<8x128xf32>
    %89 = arith.mulf %88, %87 : vector<8x128xf32>
    %cst_44 = arith.constant 0.707106769 : f32
    %90 = vector.broadcast %cst_44 : f32 to vector<8x128xf32>
    %91 = arith.mulf %87, %90 : vector<8x128xf32>
    %92 = math.erf %91 : vector<8x128xf32>
    %cst_45 = arith.constant 1.000000e+00 : f32
    %93 = vector.broadcast %cst_45 : f32 to vector<8x128xf32>
    %94 = arith.addf %93, %92 : vector<8x128xf32>
    %95 = arith.mulf %89, %94 : vector<8x128xf32>
    %c0_46 = arith.constant 0 : index
    %c0_47 = arith.constant 0 : index
    %96 = vector.load %arg12[%c0_46, %c0_47] : memref<128x128xf32, #tpu.memory_space<vmem>>, vector<128x128xf32>
    %cst_48 = arith.constant dense<0.000000e+00> : vector<8x128xf32>
    %97 = tpu.matmul %95, %96, %cst_48 {dimension_numbers = #tpu.dot_dimension_numbers<[1], [0], [0], [1], [0, 0, 1, 1], [], []>} : vector<8x128xf32>, vector<128x128xf32>, vector<8x128xf32> -> vector<8x128xf32>
    %98 = arith.addf %82, %97 : vector<8x128xf32>
    %99 = arith.addf %55, %98 : vector<8x128xf32>
    %100 = vector.shape_cast %99 : vector<8x128xf32> to vector<1x8x128xf32>
    %101 = vector.extract_strided_slice %100 {offsets = [0, 0, 0], sizes = [1, 8, 32], strides = [1, 1, 1]} : vector<1x8x128xf32> to vector<1x8x32xf32>
    %c0_49 = arith.constant 0 : index
    %c0_50 = arith.constant 0 : index
    %c0_51 = arith.constant 0 : index
    %102 = vector.load %arg14[%c0_49, %c0_50, %c0_51] : memref<1x8x32xf32, #tpu.memory_space<vmem>>, vector<1x8x32xf32>
    tpu.vector_store %arg14[%c0_49, %c0_50, %c0_51], %101 {strides = array<i32>} : memref<1x8x32xf32, #tpu.memory_space<vmem>>, vector<1x8x32xf32>,
    return
  }
  func.func @transform_0(%arg0: i32) -> (i32, i32, i32) {
    %c0_i32 = arith.constant 0 : i32
    %c0_i32_0 = arith.constant 0 : i32
    %c0_i32_1 = arith.constant 0 : i32
    return %arg0, %c0_i32, %c0_i32_0 : i32, i32, i32
  }
  func.func @transform_1(%arg0: i32) -> (i32, i32) {
    %c0_i32 = arith.constant 0 : i32
    %c0_i32_0 = arith.constant 0 : i32
    %c0_i32_1 = arith.constant 0 : i32
    return %c0_i32, %c0_i32_0 : i32, i32
  }
  func.func @transform_2(%arg0: i32) -> (i32, i32) {
    %c0_i32 = arith.constant 0 : i32
    %c0_i32_0 = arith.constant 0 : i32
    %c0_i32_1 = arith.constant 0 : i32
    return %c0_i32, %c0_i32_0 : i32, i32
  }
  func.func @transform_3(%arg0: i32) -> (i32, i32) {
    %c0_i32 = arith.constant 0 : i32
    %c0_i32_0 = arith.constant 0 : i32
    %c0_i32_1 = arith.constant 0 : i32
    return %c0_i32, %c0_i32_0 : i32, i32
  }
  func.func @transform_4(%arg0: i32) -> (i32, i32) {
    %c0_i32 = arith.constant 0 : i32
    %c0_i32_0 = arith.constant 0 : i32
    %c0_i32_1 = arith.constant 0 : i32
    return %c0_i32, %c0_i32_0 : i32, i32
  }
  func.func @transform_5(%arg0: i32) -> (i32, i32) {
    %c0_i32 = arith.constant 0 : i32
    %c0_i32_0 = arith.constant 0 : i32
    %c0_i32_1 = arith.constant 0 : i32
    return %c0_i32, %c0_i32_0 : i32, i32
  }
  func.func @transform_6(%arg0: i32) -> (i32, i32) {
    %c0_i32 = arith.constant 0 : i32
    %c0_i32_0 = arith.constant 0 : i32
    %c0_i32_1 = arith.constant 0 : i32
    return %c0_i32, %c0_i32_0 : i32, i32
  }
  func.func @transform_7(%arg0: i32) -> (i32, i32) {
    %c0_i32 = arith.constant 0 : i32
    %c0_i32_0 = arith.constant 0 : i32
    %c0_i32_1 = arith.constant 0 : i32
    return %c0_i32, %c0_i32_0 : i32, i32
  }
  func.func @transform_8(%arg0: i32) -> (i32, i32) {
    %c0_i32 = arith.constant 0 : i32
    %c0_i32_0 = arith.constant 0 : i32
    %c0_i32_1 = arith.constant 0 : i32
    return %c0_i32, %c0_i32_0 : i32, i32
  }
  func.func @transform_9(%arg0: i32) -> (i32, i32) {
    %c0_i32 = arith.constant 0 : i32
    %c0_i32_0 = arith.constant 0 : i32
    %c0_i32_1 = arith.constant 0 : i32
    return %c0_i32, %c0_i32_0 : i32, i32
  }
  func.func @transform_10(%arg0: i32) -> (i32, i32) {
    %c0_i32 = arith.constant 0 : i32
    %c0_i32_0 = arith.constant 0 : i32
    %c0_i32_1 = arith.constant 0 : i32
    return %c0_i32, %c0_i32_0 : i32, i32
  }
  func.func @transform_11(%arg0: i32) -> (i32, i32) {
    %c0_i32 = arith.constant 0 : i32
    %c0_i32_0 = arith.constant 0 : i32
    %c0_i32_1 = arith.constant 0 : i32
    return %c0_i32, %c0_i32_0 : i32, i32
  }
  func.func @transform_12(%arg0: i32) -> (i32, i32) {
    %c0_i32 = arith.constant 0 : i32
    %c0_i32_0 = arith.constant 0 : i32
    %c0_i32_1 = arith.constant 0 : i32
    return %c0_i32, %c0_i32_0 : i32, i32
  }
  func.func @transform_13(%arg0: i32) -> (i32, i32, i32) {
    %c0_i32 = arith.constant 0 : i32
    %c0_i32_0 = arith.constant 0 : i32
    %c0_i32_1 = arith.constant 0 : i32
    return %arg0, %c0_i32, %c0_i32_0 : i32, i32, i32
  }
}

</mosaic_0001>

<bundles_post_ra>
// kernel: tpu_custom_call.1
= control target key start
LH: loop header
LB: loop body
LE: loop exit
PB: predicated region body
PF: predicated region fallthrough
CT: control target
= control target key end

     0   :  { %s1788_s0 = inlined_call_operand.vmem [shape: f32[2,8,128], index: 0, kind: input, shape index: {}]   ;;  %s1789_s1 = inlined_call_operand.vmem [shape: f32[1,128], index: 1, kind: input, shape index: {}]   ;;  %s1790_s2 = inlined_call_operand.hbm [shape: f32[1,128], index: 2, kind: input, shape index: {}]   ;;  %s1791_s3 = inlined_call_operand.vmem [shape: f32[8,8], index: 3, kind: input, shape index: {}]   ;;  %s1792_s4 = inlined_call_operand.vmem [shape: f32[8,1], index: 4, kind: input, shape index: {}]   ;;  %s1793_s5 = inlined_call_operand.vmem [shape: f32[8,8], index: 5, kind: input, shape index: {}]   ;;  %s1794_s6 = inlined_call_operand.vmem [shape: f32[8,1], index: 6, kind: input, shape index: {}]   ;;  %s1795_s7 = inlined_call_operand.vmem [shape: f32[1,128], index: 7, kind: input, shape index: {}]   ;;  %s1796_s8 = inlined_call_operand.vmem [shape: f32[1,128], index: 8, kind: input, shape index: {}]   ;;  %s1797_s9 = inlined_call_operand.hbm [shape: f32[128,128], index: 9, kind: input, shape index: {}]   ;;  %s1798_s10 = inlined_call_operand.vmem [shape: f32[1,128], index: 10, kind: input, shape index: {}]   ;;  %s1799_s11 = inlined_call_operand.hbm [shape: f32[128,128], index: 11, kind: input, shape index: {}]   ;;  %s1800_s12 = inlined_call_operand.vmem [shape: f32[1,128], index: 12, kind: input, shape index: {}]   ;;  %s1801_s13 = inlined_call_operand.hbm [shape: f32[2,8,32], index: 13, kind: output, shape index: {}]  }
   0x1   :  { %1814 = sst [smem:[#allocation20_spill]] %s1800_s12 }
   0x2   :  { %1815 = sst [smem:[#allocation21_spill]] %s1801_s13 }
   0x3   :  { %18 = vsyncpa [#allocation4], 0 }
   0x4   :  { %19 = vsyncpa [#allocation7], 0 }
   0x5   :  { %20 = vsyncpa [#allocation5], 0 }
   0x6   :  { %22 = vsyncpa [#allocation5 + $0x1], 0  ;;  %s1522_s25 = smov 0   ;;  %s1524_s26 = smov 0  }
   0x7   :  { %s1526_s27 = smov 0   ;;  %s1528_s28 = smov 0  }
   0x8 LB: > { %1816 = sst [smem:[#allocation13_spill]] %s1428_s25  ;;  %s1543_s29 = sadd.s32 4294967295, %s1440_s28   ;;  %s1440_s28 = sphi %s1528_s28, %s1841_s28   ;;  %s1436_s27 = sphi %s1526_s27, %s1843_s27   ;;  %s1432_s26 = sphi %s1524_s26, %s1845_s26   ;;  %s1428_s25 = sphi %s1522_s25, %s1844_s25  }
   0x9   : > { %1817 = sst [smem:[#allocation14_spill]] %s1436_s27  ;;  %s1009_s30 = sadd.s32 4294967294, %s1440_s28  }
   0xa   : > { %1818 = sst [smem:[#allocation15_spill]] %s1440_s28  ;;  %s1547_s14 = sadd.s32 1, %s1440_s28  }
   0xb   : > { %1819 = sst [smem:[#allocation16_spill]] %s1547_s14  ;;  %s313_s15 = sadd.s32 1, %s1436_s27 }
   0xc   : > { %s310_s16 = ssub.s32 %s1440_s28, %s1547_s14  ;;  %p323_p0 = scmp.ne.s32.totalorder %s1436_s27, %s1432_s26 }
   0xd   : > { %p311_p1 = scmp.eq.s32.totalorder %s310_s16, 0  ;;  %p324_p2 = scmp.eq.s32.totalorder %s1543_s29, 1 }
   0xe   : > { %p329_p3 = scmp.ne.s32.totalorder %s1432_s26, %s1428_s25  ;;  %p330_p4 = scmp.eq.s32.totalorder %s1009_s30, 1 }
   0xf   : > { %s1558_s17 = scalar_select %p311_p1, %s1436_s27, %s313_s15  }
  0x10   : > { %p1560_p5 = por %p324_p2, %p323_p0  ;;  %p1564_p6 = por %p330_p4, %p329_p3 }
  0x11   : > { %1820 = sst [smem:[#allocation17_spill]] %s1558_s17  ;;  %p1010_p7 = scmp.ge.s32.totalorder %s1440_s28, 1 }
  0x12   : > { %s1821_s18 = scalar_select %p1560_p5, 1, 0 }
  0x13   : > { %s1823_s19 = scalar_select %p1564_p6, 1, 0 }
  0x14   : > { %1822 = sst [smem:[#allocation18_spill]] %s1821_s18  ;;  %p337_p8 = scmp.lt.s32.totalorder %s1440_s28, 3 }
  0x15   : > { %1824 = sst [smem:[#allocation19_spill]] %s1823_s19  ;;  %p1807_p9 = scmp.eq.s32.totalorder %s1543_s29, 0 }
  0x16   : > { %p1571_p10 = pnand %p1010_p7, %p337_p8  ;;  %s1442_s21 = smov [#allocation6]  }
  0x17   : > { %s381_s22 = sshll.u32 %s1442_s21, 4  ;;  %s1443_s24 = smov [#allocation3]   ;;  %s1577_s22 = int_to_ptr.vmem [resolvable:$true] %s381_s22 }
  0x18   : > { %s1825_s20 = scalar_select %p1571_p10, 1, 0 }
  0x19   : > { %p1214_p11 = pneg %p1571_p10  ;;  %s353_s30 = sshll.u32 %s1443_s24, 4  ;;  %s1585_s30 = int_to_ptr.vmem [resolvable:$true] %s353_s30 }
  0x1a   : > { %s1444_s15 = smov [#allocation8]   ;;  %s1286_s21 = scalar_lea.hbm %s1797_s9, 2048 }
  0x1b   : > { %p1581_p12 = pnand %p1807_p9, %p1214_p11  ;;  %s1587_s16 = sshll.u32 %s1444_s15, 4  ;;  %s398_s16 = int_to_ptr.vmem [resolvable:$true] %s1587_s16 }
  0x1c   : > { %p1287_p13 = scmp.ne.s32.totalorder %s1797_s9, %s1286_s21  ;;  %p1293_p3 = scmp.lt.u32.totalorder %s1286_s21, %s1797_s9 }
  0x1d   : > { %p1597_p0 = pneg %p1581_p12 }
  0x1f   : > { %p1289_p1 = pnand %p1597_p0, %p1287_p13 }
  0x21   : > { %p1290_p2 = pneg %p1289_p1 }
  0x23   : > { %p1295_p4 = pnand %p1293_p3, %p1290_p2 }
  0x25   : > { %1298 = shalt.err (!%p1295_p4)
}
  0x26   : > { %s1299_s27 = scalar_lea.vmem %s1577_s22, 2048  ;;  %p1307_p9 = scmp.lt.s32.totalorder %s1577_s22, %s1577_s22 }
  0x27   : > { %p1300_p7 = scmp.ne.s32.totalorder %s1577_s22, %s1299_s27  ;;  %p1308_p6 = scmp.lt.s32.totalorder %s1299_s27, %s1299_s27 }
  0x29   : > { %p1302_p8 = pnand %p1300_p7, %p1597_p0  ;;  %p1309_p13 = por %p1308_p6, %p1307_p9 }
  0x2b   : > { %p1303_p11 = pneg %p1302_p8 }
  0x2d   : > { %p1310_p1 = pnand %p1309_p13, %p1303_p11 }
  0x2f   : > { %1313 = shalt.err (!%p1310_p1)
}
  0x30   : > { %s1445_s14 = smov 128   ;;  %s1446_s17 = smov 8  }
  0x31   : > { %1220 = dma.hbm_to_vmem [thread:$0]  (!%p1581_p12), %s1797_s9, 2048, %s1577_s22, [#allocation7], %s1445_s14, %s1445_s14, %s1446_s17  }
  0x32   : > { %s1314_s27 = scalar_lea.hbm %s1790_s2, 16 }
  0x33   : > { %p1315_p6 = scmp.ne.s32.totalorder %s1790_s2, %s1314_s27  ;;  %p1321_p3 = scmp.lt.u32.totalorder %s1314_s27, %s1790_s2 }
  0x35   : > { %p1317_p9 = pnand %p1315_p6, %p1597_p0 }
  0x37   : > { %p1318_p2 = pneg %p1317_p9 }
  0x39   : > { %p1323_p4 = pnand %p1321_p3, %p1318_p2 }
  0x3b   : > { %1326 = shalt.err (!%p1323_p4)
}
  0x3c   : > { %s1327_s22 = scalar_lea.vmem %s1585_s30, 16  ;;  %s1334_s13 = scalar_lea.vmem %s1585_s30, 32 }
  0x3d   : > { %p1328_p7 = scmp.ne.s32.totalorder %s1585_s30, %s1327_s22  ;;  %p1335_p13 = scmp.lt.s32.totalorder %s1585_s30, %s1585_s30 }
  0x3e   : > { %p1336_p1 = scmp.lt.s32.totalorder %s1334_s13, %s1327_s22 }
  0x3f   : > { %p1330_p8 = pnand %p1328_p7, %p1597_p0 }
  0x40   : > { %p1337_p6 = por %p1336_p1, %p1335_p13 }
  0x41   : > { %p1331_p11 = pneg %p1330_p8 }
  0x43   : > { %p1338_p9 = pnand %p1337_p6, %p1331_p11 }
  0x45   : > { %1341 = shalt.err (!%p1338_p9)
}
  0x46   : > { %1217 = dma.hbm_to_vmem [thread:$0]  (!%p1581_p12), %s1790_s2, 16, %s1585_s30, [#allocation4]  }
  0x47   : > { %s1342_s21 = scalar_lea.hbm %s1799_s11, 2048 }
  0x48   : > { %p1343_p2 = scmp.ne.s32.totalorder %s1799_s11, %s1342_s21  ;;  %p1349_p7 = scmp.lt.u32.totalorder %s1342_s21, %s1799_s11 }
  0x4a   : > { %p1345_p3 = pnand %p1343_p2, %p1597_p0 }
  0x4c   : > { %p1346_p4 = pneg %p1345_p3 }
  0x4e   : > { %p1351_p8 = pnand %p1349_p7, %p1346_p4 }
  0x50   : > { %1354 = shalt.err (!%p1351_p8)
}
  0x51   : > { %s1355_s13 = scalar_lea.vmem %s398_s16, 2048  ;;  %p1363_p6 = scmp.lt.s32.totalorder %s398_s16, %s398_s16 }
  0x52   : > { %p1356_p11 = scmp.ne.s32.totalorder %s398_s16, %s1355_s13  ;;  %p1364_p9 = scmp.lt.s32.totalorder %s1355_s13, %s1355_s13 }
  0x54   : > { %p1358_p13 = pnand %p1356_p11, %p1597_p0  ;;  %p1365_p5 = por %p1364_p9, %p1363_p6 }
  0x56   : > { %p1359_p1 = pneg %p1358_p13 }
  0x58   : > { %p1366_p10 = pnand %p1365_p5, %p1359_p1 }
  0x5a   : > { %1369 = shalt.err (!%p1366_p10)
}
  0x5b   : > { %1223 = dma.hbm_to_vmem [thread:$0]  (!%p1581_p12), %s1799_s11, 2048, %s398_s16, [#allocation7], %s1445_s14, %s1445_s14, %s1446_s17  }
  0x5c   : > { %p1828_p2 = scmp.ne.s32.totalorder %s1825_s20, 0 }
  0x5d   : > { %p1829_p0 = scmp.eq.s32.totalorder (!%p1828_p2), %s1543_s29, 0 }
  0x5e   : > { %423 = sbr.rel (%p1828_p2) target bundleno = 1650 (0x672), region = 72 }
  0x65   : > { %1415 = dma.done.wait (%p1829_p0), [#allocation4], 16   ;;  %p1830_p3 = pmov %p1829_p0 }
  0x66   : > { %p1831_p5 = pmov %p1829_p0 }
  0x67   : > { %1417 = vsyncadd (%p1830_p3), [#allocation4], 4294967280 }
  0x68   : > { %1419 = dma.done.wait (%p1831_p5), [#allocation7], 4096   ;;  %p1832_p10 = pmov %p1829_p0 }
  0x69   : > { %p474_p4 = scmp.lt.s32.totalorder %s1543_s29, 1  ;;  %v1447_v1 = vmov 0.0   ;;  %v478_v2 = vlaneseq  ;;  %vm1448_vm1 = vmmov 0   ;;  %v514_v10 = vld [vmem:[%s1792_s4] sm:$0xff]  ;;  %v1449_v11 = vmov 0   ;;  %v718_v40 = vld [vmem:[#allocation6 + $0x8] sm:$0xff] }
  0x6a   : > { %1421 = vsyncadd (%p1832_p10), [#allocation7], 4294963200  ;;  %1072 = vmatprep.subr.mxu0 %v1447_v1  ;;  %1077 = vmatprep.subr.mxu1 %v1447_v1  ;;  %v520_v12 = vld [vmem:[%s1794_s6] sm:$0xff]  ;;  %vm526_vm2 = vcmask 64512   ;;  %v719_v41 = vld [vmem:[#allocation6 + $0x10] sm:$0xff]  ;;  %v1450_v42 = vmov 0.0|0.0  }
  0x6b   : > { %s475_s25 = scalar_select %p474_p4, %s1543_s29, 1  ;;  %v479_v3 = vand.u32 127, %v478_v2  ;;  %1074 = vmatprep.mubr.msk.f32.mxu0 %vm1448_vm1, %v1447_v1  ;;  %1079 = vmatprep.mubr.msk.f32.mxu1 %vm1448_vm1, %v1447_v1  ;;  %v1022_v17 = vld [vmem:[%s1789_s1] ss:$0 sm:$0xff]  ;;  %v717_v39 = vld [vmem:[#allocation6] sm:$0xff]  ;;  %v722_v47 = vld [vmem:[#allocation6 + $0x28] sm:$0xff] }
  0x6c   : > { %1276 = vset.pattern.permute.xlu1 %v1449_v11  ;;  %1277 = vset.pattern.permute.xlu0 %v1449_v11  ;;  %v1023_v19 = vld [vmem:[#allocation3] ss:$0 sm:$0xff]  ;;  %v1153_v43 = vpack.c.bf16 %v718_v40, %v717_v39  ;;  %v721_v46 = vld [vmem:[#allocation6 + $0x20] sm:$0xff]  ;;  %v723_v54 = vld [vmem:[#allocation6 + $0x30] sm:$0xff]  ;;  %s1833_s19 = sld [smem:[#allocation20_spill]]  ;;  %s1834_s21 = sld [smem:[#allocation18_spill]] }
  0x6d   : > { %s1020_s23 = sshll.u32 %s475_s25, 3  ;;  %vm480_vm0 = vcmp.lt.s32.totalorder %v479_v3, 32  ;;  %517 = vperm.xlu1 %1276, %v514_v10   ;;  %v512_v22 = vld [vmem:[%s1791_s3] sm:$0xff]  ;;  %v1159_v48 = vpack.c.bf16 %v722_v47, %v721_v46  ;;  %v726_v58 = vld [vmem:[#allocation6 + $0x48] sm:$0xff]  ;;  %v727_v60 = vld [vmem:[#allocation6 + $0x50] sm:$0xff]  ;;  %s1031_s24 = sshll.u32 %s1543_s29, 7 }
  0x6e   : > { %s477_s14 = scalar_lea.vmem %s1788_s0, %s1020_s23  ;;  %v1682_v6 = vsel %vm480_vm0, 1.0, %v1447_v1  ;;  %v513_v32 = vld [vmem:[%s1793_s5] sm:$0xff]  ;;  %v731_v2 = vld [vmem:[#allocation6 + $0x70] sm:$0xff]  ;;  %vm903_vm3 = vcmask 261120   ;;  %s1835_s30 = sld [smem:[#allocation21_spill]] }
  0x6f   : > { %v483_v0 = vld [vmem:[%s477_s14] sm:$0xff]  ;;  %s471_s14 = sand.u32 1, %s1432_s26   ;;  %s1451_s23 = smov [#allocation9]  }
  0x70   : > { %486 = vadd.xlane.f32.xlu0 %v483_v0  ;;  %v720_v44 = vld [vmem:[#allocation6 + $0x18] sm:$0xff]  ;;  %v725_v57 = vld [vmem:[#allocation6 + $0x40] sm:$0xff]  ;;  %s1019_s17 = sshll.u32 %s471_s14, 3  ;;  %s906_s25 = scalar_lea.sflag [#allocation5], %s471_s14 }
  0x71   : > { %523 = vperm.xlu1 %1276, %v520_v12   ;;  %v1156_v45 = vpack.c.bf16 %v720_v44, %v719_v41  ;;  %v724_v55 = vld [vmem:[#allocation6 + $0x38] sm:$0xff]  ;;  %v1165_v59 = vpack.c.bf16 %v726_v58, %v725_v57  ;;  %v729_v63 = vld [vmem:[#allocation6 + $0x60] sm:$0xff]  ;;  %v820_v12 = vld [vmem:[#allocation8 + $0x28] sm:$0xff]  ;;  %s473_s15 = scalar_lea.vmem [#allocation9], %s1019_s17  ;;  %s1374_s16 = sshll.u32 %s1451_s23, 4  ;;  %s1375_s16 = int_to_ptr.vmem [resolvable:$false] %s1374_s16 }
  0x72   : > { %v1162_v56 = vpack.c.bf16 %v724_v55, %v723_v54  ;;  %v728_v61 = vld [vmem:[#allocation6 + $0x58] sm:$0xff]  ;;  %v819_v11 = vld [vmem:[#allocation8 + $0x20] sm:$0xff]  ;;  %s919_s27 = sshll.u32 %s473_s15, 4  ;;  %p1836_p7 = scmp.ne.s32.totalorder %s1834_s21, 0  ;;  %s1748_s27 = int_to_ptr.vmem [resolvable:$true] %s919_s27 }
  0x73   : > { %v1168_v62 = vpack.c.bf16 %v728_v61, %v727_v60  ;;  %v732_v3 = vld [vmem:[#allocation6 + $0x78] sm:$0xff]  ;;  %s1370_s29 = scalar_lea.vmem %s1748_s27, 128  ;;  %s1376_s20 = scalar_lea.vmem %s1375_s16, 256 }
  0x74   : > { %v1029_v39 = vld [vmem:[%s1798_s10] ss:$0 sm:$0xff]  ;;  %s1746_s12 = scalar_lea.hbm %s1835_s30, %s1031_s24  ;;  %p1371_p12 = scmp.ne.s32.totalorder %s1748_s27, %s1370_s29 }
  0x75   : > { %p1377_p13 = scmp.lt.s32.totalorder %s1748_s27, %s1375_s16  ;;  %p1378_p1 = scmp.lt.s32.totalorder %s1376_s20, %s1370_s29 }
  0x76   : > { %p1372_p8 = pnand %p1371_p12, %p1836_p7 }
  0x77   : > { %p1379_p6 = por %p1378_p1, %p1377_p13 }
  0x78   : > { %p1373_p11 = pneg %p1372_p8 }
  0x7a   : > { %p1380_p9 = pnand %p1379_p6, %p1373_p11 }
  0xec   : > { %v518_v23 = vpop.permute.xlu1 %517 }
  0xf0   : > { %v524_v33 = vpop.permute.xlu1 %523 }
  0xfd   : > { %v487_v4 = vpop.xlane.xlu0 %486 }
  0xfe   : > { %v488_v5 = vmul.f32 0.03125, %v487_v4  ;;  %v1174_v4 = vpack.c.bf16 %v732_v3, %v731_v2 }
 0x100   : > { %v489_v7 = vsub.f32 %v483_v0, %v488_v5  ;;  %v815_v5 = vld [vmem:[#allocation8] sm:$0xff] }
 0x102   : > { %v490_v8 = vmul.f32 %v1682_v6, %v489_v7  ;;  %v817_v7 = vld [vmem:[#allocation8 + $0x10] sm:$0xff] }
 0x104   : > { %v491_v9 = vmul.f32 %v490_v8, %v490_v8 }
 0x106   : > { %492 = vadd.xlane.f32.xlu0 %v491_v9  ;;  %v818_v9 = vld [vmem:[#allocation8 + $0x18] sm:$0xff] }
 0x107   : > { %v1180_v10 = vpack.c.bf16 %v818_v9, %v817_v7 }
 0x193   : > { %v493_v13 = vpop.xlane.xlu0 %492 }
 0x194   : > { %v494_v14 = vmul.f32 0.03125, %v493_v13  ;;  %v1183_v13 = vpack.c.bf16 %v820_v12, %v819_v11 }
 0x196   : > { %v495_v15 = vadd.f32 1e-05, %v494_v14 }
 0x198   : > { %1278 = vrsqrt.f32 %v495_v15 }
 0x1a2   : > { %v1279_v16 = vpop.eup %1278 }
 0x1a3   : > { %v497_v18 = vmul.f32 %v1279_v16, %v490_v8 }
 0x1a5   : > { %v504_v20 = vmul.f32 %v1022_v17, %v497_v18  ;;  %v1026_v18 = vld [vmem:[%s1795_s7] ss:$0 sm:$0xff] }
 0x1a7   : > { %v511_v21 = vadd.f32 %v1023_v19, %v504_v20  ;;  %v1027_v20 = vld [vmem:[%s1796_s8] ss:$0 sm:$0xff] }
 0x1a9   : > { %1073 = vmatpush3.msra.mxu0 %v511_v21 }
 0x1aa   : > { %1075 = vmatmul.mubr.msk.f32.vlgmr.msra.gmra.mrb[0].mxu0 %vm526_vm2, %v512_v22  ;;  %1152 = vmatprep.subr.bf16.mxu0 %v1450_v42 }
 0x1ab   : > { %1114 = vmatprep.mubr.msk.f32.mxu0 %vm1448_vm1, %v1447_v1  ;;  %1154 = vmatpush3.bf16.msra.mxu0 %v1153_v43 }
 0x1ac   : > { %1155 = vmatprep.subr.bf16.mxu0 %v1450_v42 }
 0x1af   : > { %1157 = vmatpush3.bf16.msra.mxu0 %v1156_v45 }
 0x1b0   : > { %1158 = vmatprep.subr.bf16.mxu0 %v1450_v42 }
 0x1b3   : > { %1160 = vmatpush3.bf16.msra.mxu0 %v1159_v48 }
 0x1b4   : > { %1161 = vmatprep.subr.bf16.mxu0 %v1450_v42 }
 0x1b7   : > { %1163 = vmatpush3.bf16.msra.mxu0 %v1162_v56 }
 0x1b8   : > { %1164 = vmatprep.subr.bf16.mxu0 %v1450_v42 }
 0x1bb   : > { %1166 = vmatpush3.bf16.msra.mxu0 %v1165_v59 }
 0x1bc   : > { %1167 = vmatprep.subr.bf16.mxu0 %v1450_v42 }
 0x1bf   : > { %1169 = vmatpush3.bf16.msra.mxu0 %v1168_v62 }
 0x1c0   : > { %1170 = vmatprep.subr.bf16.mxu0 %v1450_v42 }
 0x27d   : > { %v596_v24 = vpop.f32.mrb[0].mxu0 }
 0x27e   : > { %v597_v25 = vadd.f32 %v596_v24, %v518_v23  ;;  %v1076_v26 = vpop.f32.mrb[1].mxu0  ;;  %v821_v23 = vld [vmem:[#allocation8 + $0x30] sm:$0xff]  ;;  %v822_v24 = vld [vmem:[#allocation8 + $0x38] sm:$0xff] }
 0x27f   : > { %v823_v26 = vld [vmem:[#allocation8 + $0x40] sm:$0xff] }
 0x280   : > { %v601_v27 = vmul.f32 0.70710677, %v597_v25  ;;  %v600_v29 = vmul.f32 0.5, %v597_v25  ;;  %v1186_v25 = vpack.c.bf16 %v822_v24, %v821_v23 }
 0x282   : > { %1280 = verf.f32 %v601_v27  ;;  %v824_v27 = vld [vmem:[#allocation8 + $0x48] sm:$0xff] }
 0x28c   : > { %v1281_v28 = vpop.eup %1280 }
 0x28d   : > { %v603_v30 = vadd.f32 1.0, %v1281_v28  ;;  %v1189_v28 = vpack.c.bf16 %v824_v27, %v823_v26 }
 0x28f   : > { %v604_v31 = vmul.f32 %v603_v30, %v600_v29  ;;  %v825_v29 = vld [vmem:[#allocation8 + $0x50] sm:$0xff]  ;;  %v826_v30 = vld [vmem:[#allocation8 + $0x58] sm:$0xff] }
 0x291   : > { %1078 = vmatpush3.msra.mxu1 %v604_v31  ;;  %v1192_v31 = vpack.c.bf16 %v826_v30, %v825_v29 }
 0x292   : > { %1080 = vmatmul.mubr.msk.f32.vlgmr.msra.gmra.mrb[0].mxu1 %vm526_vm2, %v513_v32  ;;  %1176 = vmatprep.subr.bf16.mxu1 %v1450_v42  ;;  %v827_v32 = vld [vmem:[#allocation8 + $0x60] sm:$0xff] }
 0x293   : > { %1149 = vmatprep.mubr.msk.f32.mxu1 %vm1448_vm1, %v1447_v1 }
 0x365   : > { %v674_v34 = vpop.f32.mrb[0].mxu1 }
 0x366   : > { %v675_v35 = vadd.f32 %v674_v34, %v524_v33  ;;  %v1081_v36 = vpop.f32.mrb[1].mxu1  ;;  %v828_v33 = vld [vmem:[#allocation8 + $0x68] sm:$0xff] }
 0x367   : > { %v1195_v34 = vpack.c.bf16 %v828_v33, %v827_v32  ;;  %v830_v36 = vld [vmem:[#allocation8 + $0x78] sm:$0xff] }
 0x368   : > { %v678_v37 = vmul.f32 %v1682_v6, %v675_v35  ;;  %v829_v35 = vld [vmem:[#allocation8 + $0x70] sm:$0xff] }
 0x36a   : > { %v1707_v38 = vadd.f32 %v678_v37, %v483_v0  ;;  %v730_v0 = vld [vmem:[#allocation6 + $0x68] sm:$0xff]  ;;  %v1198_v37 = vpack.c.bf16 %v830_v36, %v829_v35 }
 0x36b   : > { %v1171_v1 = vpack.c.bf16 %v730_v0, %v729_v63 }
 0x36c   : > { %684 = vadd.xlane.f32.xlu0 %v1707_v38 }
 0x36d   : > { %1172 = vmatpush3.bf16.msra.mxu0 %v1171_v1 }
 0x36e   : > { %1173 = vmatprep.subr.bf16.mxu0 %v1450_v42 }
 0x371   : > { %1175 = vmatpush3.bf16.msra.mxu0 %v1174_v4 }
 0x3f9   : > { %v685_v49 = vpop.xlane.xlu0 %684 }
 0x3fa   : > { %v686_v50 = vmul.f32 0.03125, %v685_v49 }
 0x3fc   : > { %v687_v51 = vsub.f32 %v1707_v38, %v686_v50 }
 0x3fe   : > { %v688_v52 = vmul.f32 %v1682_v6, %v687_v51  ;;  %v816_v6 = vld [vmem:[#allocation8 + $0x8] sm:$0xff] }
 0x3ff   : > { %v1177_v8 = vpack.c.bf16 %v816_v6, %v815_v5 }
 0x400   : > { %v689_v53 = vmul.f32 %v688_v52, %v688_v52 }
 0x401   : > { %1178 = vmatpush3.bf16.msra.mxu1 %v1177_v8 }
 0x402   : > { %690 = vadd.xlane.f32.xlu1 %v689_v53  ;;  %1179 = vmatprep.subr.bf16.mxu1 %v1450_v42 }
 0x405   : > { %1181 = vmatpush3.bf16.msra.mxu1 %v1180_v10 }
 0x406   : > { %1182 = vmatprep.subr.bf16.mxu1 %v1450_v42 }
 0x409   : > { %1184 = vmatpush3.bf16.msra.mxu1 %v1183_v13 }
 0x40a   : > { %1185 = vmatprep.subr.bf16.mxu1 %v1450_v42 }
 0x40d   : > { %1187 = vmatpush3.bf16.msra.mxu1 %v1186_v25 }
 0x40e   : > { %1188 = vmatprep.subr.bf16.mxu1 %v1450_v42 }
 0x411   : > { %1190 = vmatpush3.bf16.msra.mxu1 %v1189_v28 }
 0x412   : > { %1191 = vmatprep.subr.bf16.mxu1 %v1450_v42 }
 0x415   : > { %1193 = vmatpush3.bf16.msra.mxu1 %v1192_v31 }
 0x416   : > { %1194 = vmatprep.subr.bf16.mxu1 %v1450_v42 }
 0x419   : > { %1196 = vmatpush3.bf16.msra.mxu1 %v1195_v34 }
 0x41a   : > { %1197 = vmatprep.subr.bf16.mxu1 %v1450_v42  ;;  %v1028_v42 = vld [vmem:[%s1833_s19] ss:$0 sm:$0xff] }
 0x41d   : > { %1199 = vmatpush3.bf16.msra.mxu1 %v1198_v37 }
 0x48f   : > { %v691_v14 = vpop.xlane.xlu1 %690 }
 0x490   : > { %v692_v15 = vmul.f32 0.03125, %v691_v14 }
 0x492   : > { %v693_v16 = vadd.f32 1e-05, %v692_v15 }
 0x494   : > { %1282 = vrsqrt.f32 %v693_v16 }
 0x49e   : > { %v1283_v17 = vpop.eup %1282 }
 0x49f   : > { %v695_v19 = vmul.f32 %v1283_v17, %v688_v52 }
 0x4a1   : > { %v702_v21 = vmul.f32 %v1026_v18, %v695_v19 }
 0x4a3   : > { %v709_v22 = vadd.f32 %v1027_v20, %v702_v21 }
 0x4a5   : > { %1115 = vmatmul.mubr.f32.vlgmr.msra.gmra.mrb[2].mxu0 %v709_v22 }
 0x578   : > { %v806_v40 = vpop.f32.mrb[2].mxu0 }
 0x579   : > { %v807_v41 = vadd.f32 %v1029_v39, %v806_v40  ;;  %v1116_v43 = vpop.f32.mrb[3].mxu0 }
 0x57b   : > { %v811_v44 = vmul.f32 0.70710677, %v807_v41  ;;  %v810_v46 = vmul.f32 0.5, %v807_v41 }
 0x57d   : > { %1284 = verf.f32 %v811_v44 }
 0x587   : > { %v1285_v45 = vpop.eup %1284 }
 0x588   : > { %v813_v47 = vadd.f32 1.0, %v1285_v45 }
 0x58a   : > { %v814_v48 = vmul.f32 %v813_v47, %v810_v46 }
 0x58c   : > { %1150 = vmatmul.mubr.f32.vlgmr.msra.gmra.mrb[2].mxu1 %v814_v48 }
 0x65f   : > { %v897_v49 = vpop.f32.mrb[2].mxu1 }
 0x660   : > { %v901_v50 = vadd.f32 %v1028_v42, %v897_v49  ;;  %v1151_v51 = vpop.f32.mrb[3].mxu1 }
 0x662   : > { %v902_v52 = vadd.f32 %v901_v50, %v1707_v38 }
 0x664   : > { %904 = vst.msk [vmem:[%s473_s15] sm:$0xff] %vm903_vm3, %v902_v52 }
 0x665   : > { %1383 = shalt.err (!%p1380_p9)
}
 0x666   : > { %s1384_s14 = scalar_lea.hbm %s1746_s12, 128  ;;  %s1388_s18 = scalar_lea.hbm %s1835_s30, 256 }
 0x667   : > { %p1385_p2 = scmp.ne.s32.totalorder %s1746_s12, %s1384_s14  ;;  %p1389_p5 = scmp.lt.u32.totalorder %s1746_s12, %s1835_s30 }
 0x668   : > { %p1390_p10 = scmp.lt.u32.totalorder %s1388_s18, %s1384_s14  ;;  %p1392_p12 = scmp.lt.u32.totalorder %s1384_s14, %s1746_s12 }
 0x669   : > { %p1386_p0 = pnand %p1385_p2, %p1836_p7 }
 0x66a   : > { %p1391_p4 = por %p1390_p10, %p1389_p5 }
 0x66b   : > { %p1387_p3 = pneg %p1386_p0 }
 0x66c   : > { %p1393_p8 = por %p1392_p12, %p1391_p4 }
 0x66e   : > { %p1394_p11 = pnand %p1393_p8, %p1387_p3 }
 0x670   : > { %1397 = shalt.err (!%p1394_p11)
}
 0x671   : > { %1212 = dma.vmem_to_hbm [thread:$0]  (%p1836_p7), %s1748_s27, 128, %s1746_s12, %s906_s25  }
 0x672 PF: > { %s1837_s15 = sld [smem:[#allocation15_spill]]  ;;  %s1838_s22 = sld [smem:[#allocation13_spill]] }
 0x673   : > { %s1839_s13 = sld [smem:[#allocation19_spill]] }
 0x678   : > { %p1234_p13 = scmp.ge.s32.totalorder %s1837_s15, 2  ;;  %s931_s29 = sand.u32 1, %s1838_s22  }
 0x679   : > { %p1840_p1 = scmp.ne.s32.totalorder %s1839_s13, 0  ;;  %s932_s23 = scalar_lea.sflag [#allocation5], %s931_s29 }
 0x67b   : > { %p1225_p6 = pnand %p1234_p13, %p1840_p1 }
 0x67d   : > { %1423 = dma.done.wait (!%p1225_p6), %s932_s23, 128  }
 0x67e   : > { %1425 = vsyncadd (!%p1225_p6), %s932_s23, 4294967168  ;;  %s1841_s28 = sld [smem:[#allocation16_spill]]  ;;  %s1842_s16 = sld [smem:[#allocation14_spill]] }
 0x67f   : > { %s1843_s27 = sld [smem:[#allocation17_spill]]  ;;  %s1844_s25 = smov %s1432_s26 }
 0x684   : > { %p25_p9 = scmp.ge.s32.totalorder %s1841_s28, 4   ;;  %s1845_s26 = smov %s1842_s16 }
 0x686   :  { %27 = sbr.rel (!%p25_p9) target bundleno = 8 (0x8), region = 120 }
 0x68d   :  { %937 = vsyncpa [#allocation4], 1 }
 0x68e   :  { %939 = vsyncpa [#allocation4 + $0x1], 1 }
 0x68f   :  { %940 = vsyncpa [#allocation7], 1 }
 0x690   :  { %941 = vsyncpa [#allocation5], 1 }
 0x691   :  { %943 = vsyncpa [#allocation5 + $0x1], 1 }

// kernel: tpu_custom_call.1
= control target key start
LH: loop header
LB: loop body
LE: loop exit
PB: predicated region body
PF: predicated region fallthrough
CT: control target
= control target key end

     0   :  { %s1788_s0 = inlined_call_operand.vmem [shape: f32[2,8,128], index: 0, kind: input, shape index: {}]   ;;  %s1789_s1 = inlined_call_operand.vmem [shape: f32[1,128], index: 1, kind: input, shape index: {}]   ;;  %s1790_s2 = inlined_call_operand.hbm [shape: f32[1,128], index: 2, kind: input, shape index: {}]   ;;  %s1791_s3 = inlined_call_operand.vmem [shape: f32[8,8], index: 3, kind: input, shape index: {}]   ;;  %s1792_s4 = inlined_call_operand.vmem [shape: f32[8,1], index: 4, kind: input, shape index: {}]   ;;  %s1793_s5 = inlined_call_operand.vmem [shape: f32[8,8], index: 5, kind: input, shape index: {}]   ;;  %s1794_s6 = inlined_call_operand.vmem [shape: f32[8,1], index: 6, kind: input, shape index: {}]   ;;  %s1795_s7 = inlined_call_operand.vmem [shape: f32[1,128], index: 7, kind: input, shape index: {}]   ;;  %s1796_s8 = inlined_call_operand.vmem [shape: f32[1,128], index: 8, kind: input, shape index: {}]   ;;  %s1797_s9 = inlined_call_operand.hbm [shape: f32[128,128], index: 9, kind: input, shape index: {}]   ;;  %s1798_s10 = inlined_call_operand.vmem [shape: f32[1,128], index: 10, kind: input, shape index: {}]   ;;  %s1799_s11 = inlined_call_operand.hbm [shape: f32[128,128], index: 11, kind: input, shape index: {}]   ;;  %s1800_s12 = inlined_call_operand.vmem [shape: f32[1,128], index: 12, kind: input, shape index: {}]   ;;  %s1801_s13 = inlined_call_operand.hbm [shape: f32[2,8,32], index: 13, kind: output, shape index: {}]  }
   0x1   :  { %1814 = sst [smem:[#allocation20_spill]] %s1800_s12 }
   0x2   :  { %1815 = sst [smem:[#allocation21_spill]] %s1801_s13 }
   0x3   :  { %18 = vsyncpa [#allocation4], 0 }
   0x4   :  { %19 = vsyncpa [#allocation7], 0 }
   0x5   :  { %20 = vsyncpa [#allocation5], 0 }
   0x6   :  { %22 = vsyncpa [#allocation5 + $0x1], 0  ;;  %s1522_s25 = smov 0   ;;  %s1524_s26 = smov 0  }
   0x7   :  { %s1526_s27 = smov 0   ;;  %s1528_s28 = smov 0  }
   0x8 LB: > { %1816 = sst [smem:[#allocation13_spill]] %s1428_s25  ;;  %s1543_s29 = sadd.s32 4294967295, %s1440_s28   ;;  %s1440_s28 = sphi %s1528_s28, %s1841_s28   ;;  %s1436_s27 = sphi %s1526_s27, %s1843_s27   ;;  %s1432_s26 = sphi %s1524_s26, %s1845_s26   ;;  %s1428_s25 = sphi %s1522_s25, %s1844_s25  }
   0x9   : > { %1817 = sst [smem:[#allocation14_spill]] %s1436_s27  ;;  %s1009_s30 = sadd.s32 4294967294, %s1440_s28  }
   0xa   : > { %1818 = sst [smem:[#allocation15_spill]] %s1440_s28  ;;  %s1547_s14 = sadd.s32 1, %s1440_s28  }
   0xb   : > { %1819 = sst [smem:[#allocation16_spill]] %s1547_s14  ;;  %s313_s15 = sadd.s32 1, %s1436_s27 }
   0xc   : > { %s310_s16 = ssub.s32 %s1440_s28, %s1547_s14  ;;  %p323_p0 = scmp.ne.s32.totalorder %s1436_s27, %s1432_s26 }
   0xd   : > { %p311_p1 = scmp.eq.s32.totalorder %s310_s16, 0  ;;  %p324_p2 = scmp.eq.s32.totalorder %s1543_s29, 1 }
   0xe   : > { %p329_p3 = scmp.ne.s32.totalorder %s1432_s26, %s1428_s25  ;;  %p330_p4 = scmp.eq.s32.totalorder %s1009_s30, 1 }
   0xf   : > { %s1558_s17 = scalar_select %p311_p1, %s1436_s27, %s313_s15  }
  0x10   : > { %p1560_p5 = por %p324_p2, %p323_p0  ;;  %p1564_p6 = por %p330_p4, %p329_p3 }
  0x11   : > { %1820 = sst [smem:[#allocation17_spill]] %s1558_s17  ;;  %p1010_p7 = scmp.ge.s32.totalorder %s1440_s28, 1 }
  0x12   : > { %s1821_s18 = scalar_select %p1560_p5, 1, 0 }
  0x13   : > { %s1823_s19 = scalar_select %p1564_p6, 1, 0 }
  0x14   : > { %1822 = sst [smem:[#allocation18_spill]] %s1821_s18  ;;  %p337_p8 = scmp.lt.s32.totalorder %s1440_s28, 3 }
  0x15   : > { %1824 = sst [smem:[#allocation19_spill]] %s1823_s19  ;;  %p1807_p9 = scmp.eq.s32.totalorder %s1543_s29, 0 }
  0x16   : > { %p1571_p10 = pnand %p1010_p7, %p337_p8  ;;  %s1442_s21 = smov [#allocation6]  }
  0x17   : > { %s381_s22 = sshll.u32 %s1442_s21, 4  ;;  %s1443_s24 = smov [#allocation3]   ;;  %s1577_s22 = int_to_ptr.vmem [resolvable:$true] %s381_s22 }
  0x18   : > { %s1825_s20 = scalar_select %p1571_p10, 1, 0 }
  0x19   : > { %p1214_p11 = pneg %p1571_p10  ;;  %s353_s30 = sshll.u32 %s1443_s24, 4  ;;  %s1585_s30 = int_to_ptr.vmem [resolvable:$true] %s353_s30 }
  0x1a   : > { %s1444_s15 = smov [#allocation8]   ;;  %s1286_s21 = scalar_lea.hbm %s1797_s9, 2048 }
  0x1b   : > { %p1581_p12 = pnand %p1807_p9, %p1214_p11  ;;  %s1587_s16 = sshll.u32 %s1444_s15, 4  ;;  %s398_s16 = int_to_ptr.vmem [resolvable:$true] %s1587_s16 }
  0x1c   : > { %p1287_p13 = scmp.ne.s32.totalorder %s1797_s9, %s1286_s21  ;;  %p1293_p3 = scmp.lt.u32.totalorder %s1286_s21, %s1797_s9 }
  0x1d   : > { %p1597_p0 = pneg %p1581_p12 }
  0x1f   : > { %p1289_p1 = pnand %p1597_p0, %p1287_p13 }
  0x21   : > { %p1290_p2 = pneg %p1289_p1 }
  0x23   : > { %p1295_p4 = pnand %p1293_p3, %p1290_p2 }
  0x25   : > { %1298 = shalt.err (!%p1295_p4)
}
  0x26   : > { %s1299_s27 = scalar_lea.vmem %s1577_s22, 2048  ;;  %p1307_p9 = scmp.lt.s32.totalorder %s1577_s22, %s1577_s22 }
  0x27   : > { %p1300_p7 = scmp.ne.s32.totalorder %s1577_s22, %s1299_s27  ;;  %p1308_p6 = scmp.lt.s32.totalorder %s1299_s27, %s1299_s27 }
  0x29   : > { %p1302_p8 = pnand %p1300_p7, %p1597_p0  ;;  %p1309_p13 = por %p1308_p6, %p1307_p9 }
  0x2b   : > { %p1303_p11 = pneg %p1302_p8 }
  0x2d   : > { %p1310_p1 = pnand %p1309_p13, %p1303_p11 }
  0x2f   : > { %1313 = shalt.err (!%p1310_p1)
}
  0x30   : > { %s1445_s14 = smov 128   ;;  %s1446_s17 = smov 8  }
  0x31   : > { %1220 = dma.hbm_to_vmem [thread:$0]  (!%p1581_p12), %s1797_s9, 2048, %s1577_s22, [#allocation7], %s1445_s14, %s1445_s14, %s1446_s17  }
  0x32   : > { %s1314_s27 = scalar_lea.hbm %s1790_s2, 16 }
  0x33   : > { %p1315_p6 = scmp.ne.s32.totalorder %s1790_s2, %s1314_s27  ;;  %p1321_p3 = scmp.lt.u32.totalorder %s1314_s27, %s1790_s2 }
  0x35   : > { %p1317_p9 = pnand %p1315_p6, %p1597_p0 }
  0x37   : > { %p1318_p2 = pneg %p1317_p9 }
  0x39   : > { %p1323_p4 = pnand %p1321_p3, %p1318_p2 }
  0x3b   : > { %1326 = shalt.err (!%p1323_p4)
}
  0x3c   : > { %s1327_s22 = scalar_lea.vmem %s1585_s30, 16  ;;  %s1334_s13 = scalar_lea.vmem %s1585_s30, 32 }
  0x3d   : > { %p1328_p7 = scmp.ne.s32.totalorder %s1585_s30, %s1327_s22  ;;  %p1335_p13 = scmp.lt.s32.totalorder %s1585_s30, %s1585_s30 }
  0x3e   : > { %p1336_p1 = scmp.lt.s32.totalorder %s1334_s13, %s1327_s22 }
  0x3f   : > { %p1330_p8 = pnand %p1328_p7, %p1597_p0 }
  0x40   : > { %p1337_p6 = por %p1336_p1, %p1335_p13 }
  0x41   : > { %p1331_p11 = pneg %p1330_p8 }
  0x43   : > { %p1338_p9 = pnand %p1337_p6, %p1331_p11 }
  0x45   : > { %1341 = shalt.err (!%p1338_p9)
}
  0x46   : > { %1217 = dma.hbm_to_vmem [thread:$0]  (!%p1581_p12), %s1790_s2, 16, %s1585_s30, [#allocation4]  }
  0x47   : > { %s1342_s21 = scalar_lea.hbm %s1799_s11, 2048 }
  0x48   : > { %p1343_p2 = scmp.ne.s32.totalorder %s1799_s11, %s1342_s21  ;;  %p1349_p7 = scmp.lt.u32.totalorder %s1342_s21, %s1799_s11 }
  0x4a   : > { %p1345_p3 = pnand %p1343_p2, %p1597_p0 }
  0x4c   : > { %p1346_p4 = pneg %p1345_p3 }
  0x4e   : > { %p1351_p8 = pnand %p1349_p7, %p1346_p4 }
  0x50   : > { %1354 = shalt.err (!%p1351_p8)
}
  0x51   : > { %s1355_s13 = scalar_lea.vmem %s398_s16, 2048  ;;  %p1363_p6 = scmp.lt.s32.totalorder %s398_s16, %s398_s16 }
  0x52   : > { %p1356_p11 = scmp.ne.s32.totalorder %s398_s16, %s1355_s13  ;;  %p1364_p9 = scmp.lt.s32.totalorder %s1355_s13, %s1355_s13 }
  0x54   : > { %p1358_p13 = pnand %p1356_p11, %p1597_p0  ;;  %p1365_p5 = por %p1364_p9, %p1363_p6 }
  0x56   : > { %p1359_p1 = pneg %p1358_p13 }
  0x58   : > { %p1366_p10 = pnand %p1365_p5, %p1359_p1 }
  0x5a   : > { %1369 = shalt.err (!%p1366_p10)
}
  0x5b   : > { %1223 = dma.hbm_to_vmem [thread:$0]  (!%p1581_p12), %s1799_s11, 2048, %s398_s16, [#allocation7], %s1445_s14, %s1445_s14, %s1446_s17  }
  0x5c   : > { %p1828_p2 = scmp.ne.s32.totalorder %s1825_s20, 0 }
  0x5d   : > { %p1829_p0 = scmp.eq.s32.totalorder (!%p1828_p2), %s1543_s29, 0 }
  0x5e   : > { %423 = sbr.rel (%p1828_p2) target bundleno = 1650 (0x672), region = 72 }
  0x65   : > { %1415 = dma.done.wait (%p1829_p0), [#allocation4], 16   ;;  %p1830_p3 = pmov %p1829_p0 }
  0x66   : > { %p1831_p5 = pmov %p1829_p0 }
  0x67   : > { %1417 = vsyncadd (%p1830_p3), [#allocation4], 4294967280 }
  0x68   : > { %1419 = dma.done.wait (%p1831_p5), [#allocation7], 4096   ;;  %p1832_p10 = pmov %p1829_p0 }
  0x69   : > { %p474_p4 = scmp.lt.s32.totalorder %s1543_s29, 1  ;;  %v1447_v1 = vmov 0.0   ;;  %v478_v2 = vlaneseq  ;;  %vm1448_vm1 = vmmov 0   ;;  %v514_v10 = vld [vmem:[%s1792_s4] sm:$0xff]  ;;  %v1449_v11 = vmov 0   ;;  %v718_v40 = vld [vmem:[#allocation6 + $0x8] sm:$0xff] }
  0x6a   : > { %1421 = vsyncadd (%p1832_p10), [#allocation7], 4294963200  ;;  %1072 = vmatprep.subr.mxu0 %v1447_v1  ;;  %1077 = vmatprep.subr.mxu1 %v1447_v1  ;;  %v520_v12 = vld [vmem:[%s1794_s6] sm:$0xff]  ;;  %vm526_vm2 = vcmask 64512   ;;  %v719_v41 = vld [vmem:[#allocation6 + $0x10] sm:$0xff]  ;;  %v1450_v42 = vmov 0.0|0.0  }
  0x6b   : > { %s475_s25 = scalar_select %p474_p4, %s1543_s29, 1  ;;  %v479_v3 = vand.u32 127, %v478_v2  ;;  %1074 = vmatprep.mubr.msk.f32.mxu0 %vm1448_vm1, %v1447_v1  ;;  %1079 = vmatprep.mubr.msk.f32.mxu1 %vm1448_vm1, %v1447_v1  ;;  %v1022_v17 = vld [vmem:[%s1789_s1] ss:$0 sm:$0xff]  ;;  %v717_v39 = vld [vmem:[#allocation6] sm:$0xff]  ;;  %v722_v47 = vld [vmem:[#allocation6 + $0x28] sm:$0xff] }
  0x6c   : > { %1276 = vset.pattern.permute.xlu1 %v1449_v11  ;;  %1277 = vset.pattern.permute.xlu0 %v1449_v11  ;;  %v1023_v19 = vld [vmem:[#allocation3] ss:$0 sm:$0xff]  ;;  %v1153_v43 = vpack.c.bf16 %v718_v40, %v717_v39  ;;  %v721_v46 = vld [vmem:[#allocation6 + $0x20] sm:$0xff]  ;;  %v723_v54 = vld [vmem:[#allocation6 + $0x30] sm:$0xff]  ;;  %s1833_s19 = sld [smem:[#allocation20_spill]]  ;;  %s1834_s21 = sld [smem:[#allocation18_spill]] }
  0x6d   : > { %s1020_s23 = sshll.u32 %s475_s25, 3  ;;  %vm480_vm0 = vcmp.lt.s32.totalorder %v479_v3, 32  ;;  %517 = vperm.xlu1 %1276, %v514_v10   ;;  %v512_v22 = vld [vmem:[%s1791_s3] sm:$0xff]  ;;  %v1159_v48 = vpack.c.bf16 %v722_v47, %v721_v46  ;;  %v726_v58 = vld [vmem:[#allocation6 + $0x48] sm:$0xff]  ;;  %v727_v60 = vld [vmem:[#allocation6 + $0x50] sm:$0xff]  ;;  %s1031_s24 = sshll.u32 %s1543_s29, 7 }
  0x6e   : > { %s477_s14 = scalar_lea.vmem %s1788_s0, %s1020_s23  ;;  %v1682_v6 = vsel %vm480_vm0, 1.0, %v1447_v1  ;;  %v513_v32 = vld [vmem:[%s1793_s5] sm:$0xff]  ;;  %v731_v2 = vld [vmem:[#allocation6 + $0x70] sm:$0xff]  ;;  %vm903_vm3 = vcmask 261120   ;;  %s1835_s30 = sld [smem:[#allocation21_spill]] }
  0x6f   : > { %v483_v0 = vld [vmem:[%s477_s14] sm:$0xff]  ;;  %s471_s14 = sand.u32 1, %s1432_s26   ;;  %s1451_s23 = smov [#allocation9]  }
  0x70   : > { %486 = vadd.xlane.f32.xlu0 %v483_v0  ;;  %v720_v44 = vld [vmem:[#allocation6 + $0x18] sm:$0xff]  ;;  %v725_v57 = vld [vmem:[#allocation6 + $0x40] sm:$0xff]  ;;  %s1019_s17 = sshll.u32 %s471_s14, 3  ;;  %s906_s25 = scalar_lea.sflag [#allocation5], %s471_s14 }
  0x71   : > { %523 = vperm.xlu1 %1276, %v520_v12   ;;  %v1156_v45 = vpack.c.bf16 %v720_v44, %v719_v41  ;;  %v724_v55 = vld [vmem:[#allocation6 + $0x38] sm:$0xff]  ;;  %v1165_v59 = vpack.c.bf16 %v726_v58, %v725_v57  ;;  %v729_v63 = vld [vmem:[#allocation6 + $0x60] sm:$0xff]  ;;  %v820_v12 = vld [vmem:[#allocation8 + $0x28] sm:$0xff]  ;;  %s473_s15 = scalar_lea.vmem [#allocation9], %s1019_s17  ;;  %s1374_s16 = sshll.u32 %s1451_s23, 4  ;;  %s1375_s16 = int_to_ptr.vmem [resolvable:$false] %s1374_s16 }
  0x72   : > { %v1162_v56 = vpack.c.bf16 %v724_v55, %v723_v54  ;;  %v728_v61 = vld [vmem:[#allocation6 + $0x58] sm:$0xff]  ;;  %v819_v11 = vld [vmem:[#allocation8 + $0x20] sm:$0xff]  ;;  %s919_s27 = sshll.u32 %s473_s15, 4  ;;  %p1836_p7 = scmp.ne.s32.totalorder %s1834_s21, 0  ;;  %s1748_s27 = int_to_ptr.vmem [resolvable:$true] %s919_s27 }
  0x73   : > { %v1168_v62 = vpack.c.bf16 %v728_v61, %v727_v60  ;;  %v732_v3 = vld [vmem:[#allocation6 + $0x78] sm:$0xff]  ;;  %s1370_s29 = scalar_lea.vmem %s1748_s27, 128  ;;  %s1376_s20 = scalar_lea.vmem %s1375_s16, 256 }
  0x74   : > { %v1029_v39 = vld [vmem:[%s1798_s10] ss:$0 sm:$0xff]  ;;  %s1746_s12 = scalar_lea.hbm %s1835_s30, %s1031_s24  ;;  %p1371_p12 = scmp.ne.s32.totalorder %s1748_s27, %s1370_s29 }
  0x75   : > { %p1377_p13 = scmp.lt.s32.totalorder %s1748_s27, %s1375_s16  ;;  %p1378_p1 = scmp.lt.s32.totalorder %s1376_s20, %s1370_s29 }
  0x76   : > { %p1372_p8 = pnand %p1371_p12, %p1836_p7 }
  0x77   : > { %p1379_p6 = por %p1378_p1, %p1377_p13 }
  0x78   : > { %p1373_p11 = pneg %p1372_p8 }
  0x7a   : > { %p1380_p9 = pnand %p1379_p6, %p1373_p11 }
  0xec   : > { %v518_v23 = vpop.permute.xlu1 %517 }
  0xf0   : > { %v524_v33 = vpop.permute.xlu1 %523 }
  0xfd   : > { %v487_v4 = vpop.xlane.xlu0 %486 }
  0xfe   : > { %v488_v5 = vmul.f32 0.03125, %v487_v4  ;;  %v1174_v4 = vpack.c.bf16 %v732_v3, %v731_v2 }
 0x100   : > { %v489_v7 = vsub.f32 %v483_v0, %v488_v5  ;;  %v815_v5 = vld [vmem:[#allocation8] sm:$0xff] }
 0x102   : > { %v490_v8 = vmul.f32 %v1682_v6, %v489_v7  ;;  %v817_v7 = vld [vmem:[#allocation8 + $0x10] sm:$0xff] }
 0x104   : > { %v491_v9 = vmul.f32 %v490_v8, %v490_v8 }
 0x106   : > { %492 = vadd.xlane.f32.xlu0 %v491_v9  ;;  %v818_v9 = vld [vmem:[#allocation8 + $0x18] sm:$0xff] }
 0x107   : > { %v1180_v10 = vpack.c.bf16 %v818_v9, %v817_v7 }
 0x193   : > { %v493_v13 = vpop.xlane.xlu0 %492 }
 0x194   : > { %v494_v14 = vmul.f32 0.03125, %v493_v13  ;;  %v1183_v13 = vpack.c.bf16 %v820_v12, %v819_v11 }
 0x196   : > { %v495_v15 = vadd.f32 1e-05, %v494_v14 }
 0x198   : > { %1278 = vrsqrt.f32 %v495_v15 }
 0x1a2   : > { %v1279_v16 = vpop.eup %1278 }
 0x1a3   : > { %v497_v18 = vmul.f32 %v1279_v16, %v490_v8 }
 0x1a5   : > { %v504_v20 = vmul.f32 %v1022_v17, %v497_v18  ;;  %v1026_v18 = vld [vmem:[%s1795_s7] ss:$0 sm:$0xff] }
 0x1a7   : > { %v511_v21 = vadd.f32 %v1023_v19, %v504_v20  ;;  %v1027_v20 = vld [vmem:[%s1796_s8] ss:$0 sm:$0xff] }
 0x1a9   : > { %1073 = vmatpush3.msra.mxu0 %v511_v21 }
 0x1aa   : > { %1075 = vmatmul.mubr.msk.f32.vlgmr.msra.gmra.mrb[0].mxu0 %vm526_vm2, %v512_v22  ;;  %1152 = vmatprep.subr.bf16.mxu0 %v1450_v42 }
 0x1ab   : > { %1114 = vmatprep.mubr.msk.f32.mxu0 %vm1448_vm1, %v1447_v1  ;;  %1154 = vmatpush3.bf16.msra.mxu0 %v1153_v43 }
 0x1ac   : > { %1155 = vmatprep.subr.bf16.mxu0 %v1450_v42 }
 0x1af   : > { %1157 = vmatpush3.bf16.msra.mxu0 %v1156_v45 }
 0x1b0   : > { %1158 = vmatprep.subr.bf16.mxu0 %v1450_v42 }
 0x1b3   : > { %1160 = vmatpush3.bf16.msra.mxu0 %v1159_v48 }
 0x1b4   : > { %1161 = vmatprep.subr.bf16.mxu0 %v1450_v42 }
 0x1b7   : > { %1163 = vmatpush3.bf16.msra.mxu0 %v1162_v56 }
 0x1b8   : > { %1164 = vmatprep.subr.bf16.mxu0 %v1450_v42 }
 0x1bb   : > { %1166 = vmatpush3.bf16.msra.mxu0 %v1165_v59 }
 0x1bc   : > { %1167 = vmatprep.subr.bf16.mxu0 %v1450_v42 }
 0x1bf   : > { %1169 = vmatpush3.bf16.msra.mxu0 %v1168_v62 }
 0x1c0   : > { %1170 = vmatprep.subr.bf16.mxu0 %v1450_v42 }
 0x27d   : > { %v596_v24 = vpop.f32.mrb[0].mxu0 }
 0x27e   : > { %v597_v25 = vadd.f32 %v596_v24, %v518_v23  ;;  %v1076_v26 = vpop.f32.mrb[1].mxu0  ;;  %v821_v23 = vld [vmem:[#allocation8 + $0x30] sm:$0xff]  ;;  %v822_v24 = vld [vmem:[#allocation8 + $0x38] sm:$0xff] }
 0x27f   : > { %v823_v26 = vld [vmem:[#allocation8 + $0x40] sm:$0xff] }
 0x280   : > { %v601_v27 = vmul.f32 0.70710677, %v597_v25  ;;  %v600_v29 = vmul.f32 0.5, %v597_v25  ;;  %v1186_v25 = vpack.c.bf16 %v822_v24, %v821_v23 }
 0x282   : > { %1280 = verf.f32 %v601_v27  ;;  %v824_v27 = vld [vmem:[#allocation8 + $0x48] sm:$0xff] }
 0x28c   : > { %v1281_v28 = vpop.eup %1280 }
 0x28d   : > { %v603_v30 = vadd.f32 1.0, %v1281_v28  ;;  %v1189_v28 = vpack.c.bf16 %v824_v27, %v823_v26 }
 0x28f   : > { %v604_v31 = vmul.f32 %v603_v30, %v600_v29  ;;  %v825_v29 = vld [vmem:[#allocation8 + $0x50] sm:$0xff]  ;;  %v826_v30 = vld [vmem:[#allocation8 + $0x58] sm:$0xff] }
 0x291   : > { %1078 = vmatpush3.msra.mxu1 %v604_v31  ;;  %v1192_v31 = vpack.c.bf16 %v826_v30, %v825_v29 }
 0x292   : > { %1080 = vmatmul.mubr.msk.f32.vlgmr.msra.gmra.mrb[0].mxu1 %vm526_vm2, %v513_v32  ;;  %1176 = vmatprep.subr.bf16.mxu1 %v1450_v42  ;;  %v827_v32 = vld [vmem:[#allocation8 + $0x60] sm:$0xff] }
 0x293   : > { %1149 = vmatprep.mubr.msk.f32.mxu1 %vm1448_vm1, %v1447_v1 }
 0x365   : > { %v674_v34 = vpop.f32.mrb[0].mxu1 }
 0x366   : > { %v675_v35 = vadd.f32 %v674_v34, %v524_v33  ;;  %v1081_v36 = vpop.f32.mrb[1].mxu1  ;;  %v828_v33 = vld [vmem:[#allocation8 + $0x68] sm:$0xff] }
 0x367   : > { %v1195_v34 = vpack.c.bf16 %v828_v33, %v827_v32  ;;  %v830_v36 = vld [vmem:[#allocation8 + $0x78] sm:$0xff] }
 0x368   : > { %v678_v37 = vmul.f32 %v1682_v6, %v675_v35  ;;  %v829_v35 = vld [vmem:[#allocation8 + $0x70] sm:$0xff] }
 0x36a   : > { %v1707_v38 = vadd.f32 %v678_v37, %v483_v0  ;;  %v730_v0 = vld [vmem:[#allocation6 + $0x68] sm:$0xff]  ;;  %v1198_v37 = vpack.c.bf16 %v830_v36, %v829_v35 }
 0x36b   : > { %v1171_v1 = vpack.c.bf16 %v730_v0, %v729_v63 }
 0x36c   : > { %684 = vadd.xlane.f32.xlu0 %v1707_v38 }
 0x36d   : > { %1172 = vmatpush3.bf16.msra.mxu0 %v1171_v1 }
 0x36e   : > { %1173 = vmatprep.subr.bf16.mxu0 %v1450_v42 }
 0x371   : > { %1175 = vmatpush3.bf16.msra.mxu0 %v1174_v4 }
 0x3f9   : > { %v685_v49 = vpop.xlane.xlu0 %684 }
 0x3fa   : > { %v686_v50 = vmul.f32 0.03125, %v685_v49 }
 0x3fc   : > { %v687_v51 = vsub.f32 %v1707_v38, %v686_v50 }
 0x3fe   : > { %v688_v52 = vmul.f32 %v1682_v6, %v687_v51  ;;  %v816_v6 = vld [vmem:[#allocation8 + $0x8] sm:$0xff] }
 0x3ff   : > { %v1177_v8 = vpack.c.bf16 %v816_v6, %v815_v5 }
 0x400   : > { %v689_v53 = vmul.f32 %v688_v52, %v688_v52 }
 0x401   : > { %1178 = vmatpush3.bf16.msra.mxu1 %v1177_v8 }
 0x402   : > { %690 = vadd.xlane.f32.xlu1 %v689_v53  ;;  %1179 = vmatprep.subr.bf16.mxu1 %v1450_v42 }
 0x405   : > { %1181 = vmatpush3.bf16.msra.mxu1 %v1180_v10 }
 0x406   : > { %1182 = vmatprep.subr.bf16.mxu1 %v1450_v42 }
 0x409   : > { %1184 = vmatpush3.bf16.msra.mxu1 %v1183_v13 }
 0x40a   : > { %1185 = vmatprep.subr.bf16.mxu1 %v1450_v42 }
 0x40d   : > { %1187 = vmatpush3.bf16.msra.mxu1 %v1186_v25 }
 0x40e   : > { %1188 = vmatprep.subr.bf16.mxu1 %v1450_v42 }
 0x411   : > { %1190 = vmatpush3.bf16.msra.mxu1 %v1189_v28 }
 0x412   : > { %1191 = vmatprep.subr.bf16.mxu1 %v1450_v42 }
 0x415   : > { %1193 = vmatpush3.bf16.msra.mxu1 %v1192_v31 }
 0x416   : > { %1194 = vmatprep.subr.bf16.mxu1 %v1450_v42 }
 0x419   : > { %1196 = vmatpush3.bf16.msra.mxu1 %v1195_v34 }
 0x41a   : > { %1197 = vmatprep.subr.bf16.mxu1 %v1450_v42  ;;  %v1028_v42 = vld [vmem:[%s1833_s19] ss:$0 sm:$0xff] }
 0x41d   : > { %1199 = vmatpush3.bf16.msra.mxu1 %v1198_v37 }
 0x48f   : > { %v691_v14 = vpop.xlane.xlu1 %690 }
 0x490   : > { %v692_v15 = vmul.f32 0.03125, %v691_v14 }
 0x492   : > { %v693_v16 = vadd.f32 1e-05, %v692_v15 }
 0x494   : > { %1282 = vrsqrt.f32 %v693_v16 }
 0x49e   : > { %v1283_v17 = vpop.eup %1282 }
 0x49f   : > { %v695_v19 = vmul.f32 %v1283_v17, %v688_v52 }
 0x4a1   : > { %v702_v21 = vmul.f32 %v1026_v18, %v695_v19 }
 0x4a3   : > { %v709_v22 = vadd.f32 %v1027_v20, %v702_v21 }
 0x4a5   : > { %1115 = vmatmul.mubr.f32.vlgmr.msra.gmra.mrb[2].mxu0 %v709_v22 }
 0x578   : > { %v806_v40 = vpop.f32.mrb[2].mxu0 }
 0x579   : > { %v807_v41 = vadd.f32 %v1029_v39, %v806_v40  ;;  %v1116_v43 = vpop.f32.mrb[3].mxu0 }
 0x57b   : > { %v811_v44 = vmul.f32 0.70710677, %v807_v41  ;;  %v810_v46 = vmul.f32 0.5, %v807_v41 }
 0x57d   : > { %1284 = verf.f32 %v811_v44 }
 0x587   : > { %v1285_v45 = vpop.eup %1284 }
 0x588   : > { %v813_v47 = vadd.f32 1.0, %v1285_v45 }
 0x58a   : > { %v814_v48 = vmul.f32 %v813_v47, %v810_v46 }
 0x58c   : > { %1150 = vmatmul.mubr.f32.vlgmr.msra.gmra.mrb[2].mxu1 %v814_v48 }
 0x65f   : > { %v897_v49 = vpop.f32.mrb[2].mxu1 }
 0x660   : > { %v901_v50 = vadd.f32 %v1028_v42, %v897_v49  ;;  %v1151_v51 = vpop.f32.mrb[3].mxu1 }
 0x662   : > { %v902_v52 = vadd.f32 %v901_v50, %v1707_v38 }
 0x664   : > { %904 = vst.msk [vmem:[%s473_s15] sm:$0xff] %vm903_vm3, %v902_v52 }
 0x665   : > { %1383 = shalt.err (!%p1380_p9)
}
 0x666   : > { %s1384_s14 = scalar_lea.hbm %s1746_s12, 128  ;;  %s1388_s18 = scalar_lea.hbm %s1835_s30, 256 }
 0x667   : > { %p1385_p2 = scmp.ne.s32.totalorder %s1746_s12, %s1384_s14  ;;  %p1389_p5 = scmp.lt.u32.totalorder %s1746_s12, %s1835_s30 }
 0x668   : > { %p1390_p10 = scmp.lt.u32.totalorder %s1388_s18, %s1384_s14  ;;  %p1392_p12 = scmp.lt.u32.totalorder %s1384_s14, %s1746_s12 }
 0x669   : > { %p1386_p0 = pnand %p1385_p2, %p1836_p7 }
 0x66a   : > { %p1391_p4 = por %p1390_p10, %p1389_p5 }
 0x66b   : > { %p1387_p3 = pneg %p1386_p0 }
 0x66c   : > { %p1393_p8 = por %p1392_p12, %p1391_p4 }
 0x66e   : > { %p1394_p11 = pnand %p1393_p8, %p1387_p3 }
 0x670   : > { %1397 = shalt.err (!%p1394_p11)
}
 0x671   : > { %1212 = dma.vmem_to_hbm [thread:$0]  (%p1836_p7), %s1748_s27, 128, %s1746_s12, %s906_s25  }
 0x672 PF: > { %s1837_s15 = sld [smem:[#allocation15_spill]]  ;;  %s1838_s22 = sld [smem:[#allocation13_spill]] }
 0x673   : > { %s1839_s13 = sld [smem:[#allocation19_spill]] }
 0x678   : > { %p1234_p13 = scmp.ge.s32.totalorder %s1837_s15, 2  ;;  %s931_s29 = sand.u32 1, %s1838_s22  }
 0x679   : > { %p1840_p1 = scmp.ne.s32.totalorder %s1839_s13, 0  ;;  %s932_s23 = scalar_lea.sflag [#allocation5], %s931_s29 }
 0x67b   : > { %p1225_p6 = pnand %p1234_p13, %p1840_p1 }
 0x67d   : > { %1423 = dma.done.wait (!%p1225_p6), %s932_s23, 128  }
 0x67e   : > { %1425 = vsyncadd (!%p1225_p6), %s932_s23, 4294967168  ;;  %s1841_s28 = sld [smem:[#allocation16_spill]]  ;;  %s1842_s16 = sld [smem:[#allocation14_spill]] }
 0x67f   : > { %s1843_s27 = sld [smem:[#allocation17_spill]]  ;;  %s1844_s25 = smov %s1432_s26 }
 0x684   : > { %p25_p9 = scmp.ge.s32.totalorder %s1841_s28, 4   ;;  %s1845_s26 = smov %s1842_s16 }
 0x686   :  { %27 = sbr.rel (!%p25_p9) target bundleno = 8 (0x8), region = 120 }
 0x68d   :  { %937 = vsyncpa [#allocation4], 1 }
 0x68e   :  { %939 = vsyncpa [#allocation4 + $0x1], 1 }
 0x68f   :  { %940 = vsyncpa [#allocation7], 1 }
 0x690   :  { %941 = vsyncpa [#allocation5], 1 }
 0x691   :  { %943 = vsyncpa [#allocation5 + $0x1], 1 }

</bundles_post_ra>
